<compile_context>
chip_gen: v7x
topology: tpu7x:2x2x1
jax: 0.10.0
libtpu: 0.0.40
codegen_flags: <defaults>
</compile_context>

<pallas_src>
import functools
from typing import NamedTuple

import numpy as np
import jax
import jax.numpy as jnp
from jax.experimental import pallas as pl
from jax.experimental.pallas import tpu as pltpu


class _Dims(NamedTuple):
    C: int
    H: int
    W: int
    k: int
    pad: int
    C_feat: int
    NC: int
    WF: int
    WPC: int
    WPCp: int
    CFp: int
    NCp: int


def _round_up(n, m):
    return ((n + m - 1) // m) * m


def _shift_up(p, n):
    """Rows r <- r+n (whole-array sublane shift). The n wrapped bottom rows are
    garbage but land on rows the block-diagonal row-sum matrix zeroes out."""
    return jnp.concatenate([p[n:], p[:n]], axis=0)


def _classifier_kernel(x_ref, kmat_ref, bc_ref, srow_ref, pool_ref, wh_ref, bh_ref,
                       logits_ref, feats_ref=None):
    # x_ref    : (Bt*Hp, WPCp) bf16  stacked zero-padded input rows, channel-minor
    # kmat_ref : (k, WPCp, WF)  bf16  banded conv weights (one slab per row-tap dh)
    # bc_ref   : (1, WF)        f32   conv bias tiled over W
    # srow_ref : (Bt, Bt*Hp)    bf16  block-diag 1/H row-sum (masks padding/garbage rows)
    # pool_ref : (WF, CFp)      bf16  1/W block-diag pooling matrix
    # wh_ref   : (CFp, NCp)     bf16  head weight (transposed, zero-padded)
    # bh_ref   : (1, NCp)       f32   head bias (zero-padded)
    # logits_ref: (Bt, NCp) f32 ; feats_ref: (Bt, CFp) f32 (only when features requested)
    k = kmat_ref.shape[0]
    x = x_ref[...]                                                  # (Bt*Hp, WPCp) bf16

    # Conv: k batched banded MXU matmuls over the full image stack (M = Bt*Hp),
    # accumulated in f32 with whole-array dh row-shifts (acc initialized from tap 0).
    acc = jnp.dot(x, kmat_ref[0], preferred_element_type=jnp.float32)
    for dh in range(1, k):
        p = jnp.dot(x, kmat_ref[dh], preferred_element_type=jnp.float32)
        acc = acc + _shift_up(p, dh)

    # Conv bias (single hoisted broadcast) + ReLU, back to bf16 for the MXU path.
    h_act = jnp.maximum(acc + bc_ref[...], 0.0).astype(jnp.bfloat16)  # (Bt*Hp, WF)

    # Batched global average pool, entirely on the MXU:
    #   (Bt, Bt*Hp) 1/H row-sum (also drops pad/garbage rows), then (WF, CFp) 1/W pool.
    pooled = jnp.dot(srow_ref[...], h_act, preferred_element_type=jnp.float32)  # (Bt, WF)
    feats = jnp.dot(pooled.astype(jnp.bfloat16), pool_ref[...],
                    preferred_element_type=jnp.float32)                         # (Bt, CFp)
    if feats_ref is not None:
        feats_ref[...] = feats.astype(feats_ref.dtype)

    # Classification head: ONE batched matmul per grid step.
    logits = jnp.dot(feats.astype(jnp.bfloat16), wh_ref[...],
                     preferred_element_type=jnp.float32) + bh_ref[...]
    logits_ref[...] = logits.astype(logits_ref.dtype)


def pack_params(params, *, C, H, W):
    """One-time host-side packing of the module weights into MXU-friendly slabs."""
    w_conv = np.asarray(params["conv_w"], np.float32)   # (C_feat, C, k, k)  PyTorch layout
    b_conv = np.asarray(params["conv_b"], np.float32)   # (C_feat,)
    w_head = np.asarray(params["head_w"], np.float32)   # (NC, C_feat)       PyTorch Linear
    b_head = np.asarray(params["head_b"], np.float32)   # (NC,)

    C_feat, C_in, k, _ = w_conv.shape
    assert C_in == C
    NC = w_head.shape[0]
    pad = (k - 1) // 2
    Wp = W + 2 * pad

    WF = W * C_feat                     # conv-output lane width (w-major, o-minor)
    WPC = Wp * C                        # padded-input lane width (wq-major, c-minor)
    WPCp = _round_up(WPC, 128)
    CFp = _round_up(C_feat, 128)
    NCp = _round_up(NC, 128)

    # banded conv weights: kmat[dh, (w+dw)*C + c, w*C_feat + o] = w_conv[o, c, dh, dw]
    kmat = np.zeros((k, WPCp, WF), np.float32)
    for dh in range(k):
        for dw in range(k):
            tap = w_conv[:, :, dh, dw].T                 # (C, C_feat)
            for w in range(W):
                r0 = (w + dw) * C
                c0 = w * C_feat
                kmat[dh, r0:r0 + C, c0:c0 + C_feat] = tap

    bc = np.tile(b_conv, W).reshape(1, WF)

    # 1/W block-diagonal pooling matrix (1/H lives in the row-sum matrix).
    pool = np.zeros((WF, CFp), np.float32)
    eye = np.eye(C_feat, dtype=np.float32) / float(W)
    for w in range(W):
        pool[w * C_feat:(w + 1) * C_feat, :C_feat] = eye

    wh = np.zeros((CFp, NCp), np.float32)
    wh[:C_feat, :NC] = w_head.T
    bh = np.zeros((1, NCp), np.float32)
    bh[0, :NC] = b_head

    dims = _Dims(C=C, H=H, W=W, k=k, pad=pad, C_feat=C_feat, NC=NC,
                 WF=WF, WPC=WPC, WPCp=WPCp, CFp=CFp, NCp=NCp)
    return {
        "kmat": jnp.asarray(kmat, jnp.bfloat16),
        "bc": jnp.asarray(bc, jnp.float32),
        "pool": jnp.asarray(pool, jnp.bfloat16),
        "wh": jnp.asarray(wh, jnp.bfloat16),
        "bh": jnp.asarray(bh, jnp.float32),
        "dims": dims,
    }


@functools.lru_cache(maxsize=None)
def _rowsum_matrix(Bt, H, Hp):
    """(Bt, Bt*Hp) block-diagonal 1/H row-sum; zero on padding / cross-image rows."""
    s = np.zeros((Bt, Bt * Hp), np.float32)
    for bl in range(Bt):
        s[bl, bl * Hp: bl * Hp + H] = 1.0 / float(H)
    return jnp.asarray(s, jnp.bfloat16)


@functools.partial(jax.jit, static_argnames=("dims", "Bt", "return_features"))
def _forward_jit(x, kmat, bc, srow, pool, wh, bh, *, dims, Bt, return_features):
    d = dims
    B = x.shape[0]
    Hp = d.H + 2 * d.pad
    Wp = d.W + 2 * d.pad
    # Pad the batch so the grid always has >= 2 "parallel" steps (v7x megacore,
    # pipelining overlap) and every step does full batched-matmul work.
    B_pad = Bt * max(2, pl.cdiv(B, Bt))
    G = B_pad // Bt
    BtHp = Bt * Hp

    # Input relayout (minimal wrapper traffic): NCHW f32 -> bf16 FIRST, then one
    # spatial/batch zero-pad, channel-minor reshape, one lane pad to 128.
    # NOTE: the f32->bf16 cast of the input is an intentional precision choice
    # (MXU bf16 operands, f32 accumulation).
    xb = x.astype(jnp.bfloat16)
    xb = jnp.transpose(xb, (0, 2, 3, 1))                                 # (B, H, W, C)
    xb = jnp.pad(xb, ((0, B_pad - B), (d.pad, d.pad), (d.pad, d.pad), (0, 0)))
    xb = xb.reshape(B_pad, Hp, Wp * d.C)
    xb = jnp.pad(xb, ((0, 0), (0, 0), (0, d.WPCp - d.WPC)))
    xp2 = xb.reshape(B_pad * Hp, d.WPCp)                                  # (B_pad*Hp, WPCp)

    in_specs = [
        pl.BlockSpec((BtHp, d.WPCp), lambda i: (i, 0)),
        pl.BlockSpec((d.k, d.WPCp, d.WF), lambda i: (0, 0, 0)),   # grid-invariant
        pl.BlockSpec((1, d.WF), lambda i: (0, 0)),
        pl.BlockSpec((Bt, BtHp), lambda i: (0, 0)),
        pl.BlockSpec((d.WF, d.CFp), lambda i: (0, 0)),
        pl.BlockSpec((d.CFp, d.NCp), lambda i: (0, 0)),
        pl.BlockSpec((1, d.NCp), lambda i: (0, 0)),
    ]

    if return_features:
        out_shape = (jax.ShapeDtypeStruct((B_pad, d.NCp), jnp.float32),
                     jax.ShapeDtypeStruct((B_pad, d.CFp), jnp.float32))
        out_specs = (pl.BlockSpec((Bt, d.NCp), lambda i: (i, 0)),
                     pl.BlockSpec((Bt, d.CFp), lambda i: (i, 0)))
    else:
        out_shape = jax.ShapeDtypeStruct((B_pad, d.NCp), jnp.float32)
        out_specs = pl.BlockSpec((Bt, d.NCp), lambda i: (i, 0))

    grid_spec = pltpu.PrefetchScalarGridSpec(
        num_scalar_prefetch=0,
        grid=(G,),
        in_specs=in_specs,
        out_specs=out_specs,
    )

    outs = pl.pallas_call(
        _classifier_kernel,
        out_shape=out_shape,
        grid_spec=grid_spec,
        compiler_params=pltpu.CompilerParams(
            dimension_semantics=("parallel",),
            vmem_limit_bytes=32 * 1024 * 1024),
    )(xp2, kmat, bc, srow, pool, wh, bh)

    if return_features:
        logits_p, feats_p = outs
        return logits_p[:B, :d.NC], feats_p[:B, :d.C_feat]
    return outs[:B, :d.NC]


def image_classifier_forward(x, packed, return_features=False):
    """x: (B, C, H, W) float32 NCHW, like the PyTorch module.  `packed` from pack_params."""
    dims = packed["dims"]
    B = x.shape[0]
    Bt = 16 if B >= 32 else 8          # conv M = Bt*Hp >= 144 (>=288 for big batches)
    Hp = dims.H + 2 * dims.pad
    srow = _rowsum_matrix(Bt, dims.H, Hp)
    return _forward_jit(x, packed["kmat"], packed["bc"], srow, packed["pool"],
                        packed["wh"], packed["bh"],
                        dims=dims, Bt=Bt, return_features=return_features)


def _reference_forward(x, params):
    """Plain-JAX f32 reference mirroring the PyTorch semantics (for checking)."""
    out = jax.lax.conv_general_dilated(
        x, params["conv_w"], window_strides=(1, 1), padding=((1, 1), (1, 1)),
        dimension_numbers=("NCHW", "OIHW", "NCHW"))
    out = out + params["conv_b"][None, :, None, None]
    out = jnp.maximum(out, 0.0)
    feats = out.mean(axis=(2, 3))                                # (B, C_feat)
    logits = feats @ params["head_w"].T + params["head_b"]
    return logits, feats


if __name__ == "__main__":
    # Small shapes consistent with an image classifier.
    B, C, H, W = 2, 4, 16, 16
    C_feat, NC, k = 32, 10, 3

    key = jax.random.PRNGKey(0)
    kx, kw1, kb1, kw2, kb2 = jax.random.split(key, 5)

    x = jax.random.normal(kx, (B, C, H, W), dtype=jnp.float32)
    params = {
        "conv_w": jax.random.normal(kw1, (C_feat, C, k, k), jnp.float32) * 0.1,
        "conv_b": jax.random.normal(kb1, (C_feat,), jnp.float32) * 0.1,
        "head_w": jax.random.normal(kw2, (NC, C_feat), jnp.float32) * 0.1,
        "head_b": jax.random.normal(kb2, (NC,), jnp.float32) * 0.1,
    }

    packed = pack_params(params, C=C, H=H, W=W)        # one-time weight packing

    logits, feats = image_classifier_forward(x, packed, return_features=True)
    logits = jax.block_until_ready(logits)
    feats = jax.block_until_ready(feats)

    # Also exercise the logits-only variant (compiled without the feats output).
    logits_only = jax.block_until_ready(image_classifier_forward(x, packed))

    ref_logits, ref_feats = _reference_forward(x, params)
    assert logits.shape == (B, NC) and feats.shape == (B, C_feat)
    # bf16 operands with f32 accumulation -> small quantization error vs f32 reference.
    assert jnp.allclose(logits, ref_logits, atol=3e-2, rtol=3e-2), (
        float(jnp.max(jnp.abs(logits - ref_logits))))
    assert jnp.allclose(feats, ref_feats, atol=3e-2, rtol=3e-2), (
        float(jnp.max(jnp.abs(feats - ref_feats))))
    assert jnp.allclose(logits_only, logits, atol=1e-5, rtol=1e-5)

    print("KERNEL_OK")
</pallas_src>

<mosaic_0001>
module attributes {stable_mosaic.version = 11 : i64} {
  func.func @_classifier_kernel(%arg0: i32, %arg1: memref<144x128xbf16, #tpu.memory_space<vmem>>, %arg2: memref<3x128x512xbf16, #tpu.memory_space<vmem>>, %arg3: memref<1x512xf32, #tpu.memory_space<vmem>>, %arg4: memref<8x144xbf16, #tpu.memory_space<vmem>>, %arg5: memref<512x128xbf16, #tpu.memory_space<vmem>>, %arg6: memref<128x128xbf16, #tpu.memory_space<vmem>>, %arg7: memref<1x128xf32, #tpu.memory_space<vmem>>, %arg8: memref<8x128xf32, #tpu.memory_space<vmem>>, %arg9: memref<8x128xf32, #tpu.memory_space<vmem>>) attributes {dimension_semantics = [#tpu.dimension_semantics<parallel>], iteration_bounds = array<i64: 2>, scalar_prefetch = 0 : i64, scratch_operands = 0 : i64, tpu.core_type = #tpu.core_type<tc>, window_params = [{transform_indices = @transform_0, window_bounds = array<i64: 144, 128>}, {pipeline_mode = #tpu.pipeline_mode<synchronous>, transform_indices = @transform_1, window_bounds = array<i64: 3, 128, 512>}, {pipeline_mode = #tpu.pipeline_mode<synchronous>, transform_indices = @transform_2, window_bounds = array<i64: 1, 512>}, {pipeline_mode = #tpu.pipeline_mode<synchronous>, transform_indices = @transform_3, window_bounds = array<i64: 8, 144>}, {pipeline_mode = #tpu.pipeline_mode<synchronous>, transform_indices = @transform_4, window_bounds = array<i64: 512, 128>}, {pipeline_mode = #tpu.pipeline_mode<synchronous>, transform_indices = @transform_5, window_bounds = array<i64: 128, 128>}, {pipeline_mode = #tpu.pipeline_mode<synchronous>, transform_indices = @transform_6, window_bounds = array<i64: 1, 128>}, {transform_indices = @transform_7, window_bounds = array<i64: 8, 128>}, {transform_indices = @transform_8, window_bounds = array<i64: 8, 128>}]} {
    %c0 = arith.constant 0 : index
    %c0_0 = arith.constant 0 : index
    %0 = vector.load %arg1[%c0, %c0_0] : memref<144x128xbf16, #tpu.memory_space<vmem>>, vector<144x128xbf16>
    %c0_1 = arith.constant 0 : index
    %c0_2 = arith.constant 0 : index
    %c0_3 = arith.constant 0 : index
    %1 = vector.load %arg2[%c0_1, %c0_2, %c0_3] : memref<3x128x512xbf16, #tpu.memory_space<vmem>>, vector<1x128x512xbf16>
    %2 = vector.shape_cast %1 : vector<1x128x512xbf16> to vector<128x512xbf16>
    %cst = arith.constant dense<0.000000e+00> : vector<144x512xf32>
    %3 = tpu.matmul %0, %2, %cst {dimension_numbers = #tpu.dot_dimension_numbers<[1], [0], [0], [1], [0, 0, 1, 1], [], []>} : vector<144x128xbf16>, vector<128x512xbf16>, vector<144x512xf32> -> vector<144x512xf32>
    %c1 = arith.constant 1 : index
    %c0_4 = arith.constant 0 : index
    %c0_5 = arith.constant 0 : index
    %4 = vector.load %arg2[%c1, %c0_4, %c0_5] : memref<3x128x512xbf16, #tpu.memory_space<vmem>>, vector<1x128x512xbf16>
    %5 = vector.shape_cast %4 : vector<1x128x512xbf16> to vector<128x512xbf16>
    %cst_6 = arith.constant dense<0.000000e+00> : vector<144x512xf32>
    %6 = tpu.matmul %0, %5, %cst_6 {dimension_numbers = #tpu.dot_dimension_numbers<[1], [0], [0], [1], [0, 0, 1, 1], [], []>} : vector<144x128xbf16>, vector<128x512xbf16>, vector<144x512xf32> -> vector<144x512xf32>
    %7 = vector.extract_strided_slice %6 {offsets = [1, 0], sizes = [143, 512], strides = [1, 1]} : vector<144x512xf32> to vector<143x512xf32>
    %8 = vector.extract_strided_slice %6 {offsets = [0, 0], sizes = [1, 512], strides = [1, 1]} : vector<144x512xf32> to vector<1x512xf32>
    %9 = tpu.concatenate %7, %8 in 0 : vector<143x512xf32>, vector<1x512xf32> -> vector<144x512xf32>
    %10 = arith.addf %3, %9 : vector<144x512xf32>
    %c2 = arith.constant 2 : index
    %c0_7 = arith.constant 0 : index
    %c0_8 = arith.constant 0 : index
    %11 = vector.load %arg2[%c2, %c0_7, %c0_8] : memref<3x128x512xbf16, #tpu.memory_space<vmem>>, vector<1x128x512xbf16>
    %12 = vector.shape_cast %11 : vector<1x128x512xbf16> to vector<128x512xbf16>
    %cst_9 = arith.constant dense<0.000000e+00> : vector<144x512xf32>
    %13 = tpu.matmul %0, %12, %cst_9 {dimension_numbers = #tpu.dot_dimension_numbers<[1], [0], [0], [1], [0, 0, 1, 1], [], []>} : vector<144x128xbf16>, vector<128x512xbf16>, vector<144x512xf32> -> vector<144x512xf32>
    %14 = vector.extract_strided_slice %13 {offsets = [2, 0], sizes = [142, 512], strides = [1, 1]} : vector<144x512xf32> to vector<142x512xf32>
    %15 = vector.extract_strided_slice %13 {offsets = [0, 0], sizes = [2, 512], strides = [1, 1]} : vector<144x512xf32> to vector<2x512xf32>
    %16 = tpu.concatenate %14, %15 in 0 : vector<142x512xf32>, vector<2x512xf32> -> vector<144x512xf32>
    %17 = arith.addf %10, %16 : vector<144x512xf32>
    %c0_10 = arith.constant 0 : index
    %c0_11 = arith.constant 0 : index
    %18 = vector.load %arg3[%c0_10, %c0_11] : memref<1x512xf32, #tpu.memory_space<vmem>>, vector<1x512xf32>
    %19 = vector.broadcast %18 : vector<1x512xf32> to vector<144x512xf32>
    %20 = arith.addf %17, %19 : vector<144x512xf32>
    %cst_12 = arith.constant 0.000000e+00 : f32
    %21 = vector.broadcast %cst_12 : f32 to vector<144x512xf32>
    %22 = arith.maximumf %20, %21 : vector<144x512xf32>
    %23 = arith.truncf %22 : vector<144x512xf32> to vector<144x512xbf16>
    %c0_13 = arith.constant 0 : index
    %c0_14 = arith.constant 0 : index
    %24 = vector.load %arg4[%c0_13, %c0_14] : memref<8x144xbf16, #tpu.memory_space<vmem>>, vector<8x144xbf16>
    %cst_15 = arith.constant dense<0.000000e+00> : vector<8x512xf32>
    %25 = tpu.matmul %24, %23, %cst_15 {dimension_numbers = #tpu.dot_dimension_numbers<[1], [0], [0], [1], [0, 0, 1, 1], [], []>} : vector<8x144xbf16>, vector<144x512xbf16>, vector<8x512xf32> -> vector<8x512xf32>
    %26 = arith.truncf %25 : vector<8x512xf32> to vector<8x512xbf16>
    %c0_16 = arith.constant 0 : index
    %c0_17 = arith.constant 0 : index
    %27 = vector.load %arg5[%c0_16, %c0_17] : memref<512x128xbf16, #tpu.memory_space<vmem>>, vector<512x128xbf16>
    %cst_18 = arith.constant dense<0.000000e+00> : vector<8x128xf32>
    %28 = tpu.matmul %26, %27, %cst_18 {dimension_numbers = #tpu.dot_dimension_numbers<[1], [0], [0], [1], [0, 0, 1, 1], [], []>} : vector<8x512xbf16>, vector<512x128xbf16>, vector<8x128xf32> -> vector<8x128xf32>
    %c0_19 = arith.constant 0 : index
    %c0_20 = arith.constant 0 : index
    %29 = vector.load %arg9[%c0_19, %c0_20] : memref<8x128xf32, #tpu.memory_space<vmem>>, vector<8x128xf32>
    tpu.vector_store %arg9[%c0_19, %c0_20], %28 {strides = array<i32>} : memref<8x128xf32, #tpu.memory_space<vmem>>, vector<8x128xf32>,
    %30 = arith.truncf %28 : vector<8x128xf32> to vector<8x128xbf16>
    %c0_21 = arith.constant 0 : index
    %c0_22 = arith.constant 0 : index
    %31 = vector.load %arg6[%c0_21, %c0_22] : memref<128x128xbf16, #tpu.memory_space<vmem>>, vector<128x128xbf16>
    %cst_23 = arith.constant dense<0.000000e+00> : vector<8x128xf32>
    %32 = tpu.matmul %30, %31, %cst_23 {dimension_numbers = #tpu.dot_dimension_numbers<[1], [0], [0], [1], [0, 0, 1, 1], [], []>} : vector<8x128xbf16>, vector<128x128xbf16>, vector<8x128xf32> -> vector<8x128xf32>
    %c0_24 = arith.constant 0 : index
    %c0_25 = arith.constant 0 : index
    %33 = vector.load %arg7[%c0_24, %c0_25] : memref<1x128xf32, #tpu.memory_space<vmem>>, vector<1x128xf32>
    %34 = vector.broadcast %33 : vector<1x128xf32> to vector<8x128xf32>
    %35 = arith.addf %32, %34 : vector<8x128xf32>
    %c0_26 = arith.constant 0 : index
    %c0_27 = arith.constant 0 : index
    %36 = vector.load %arg8[%c0_26, %c0_27] : memref<8x128xf32, #tpu.memory_space<vmem>>, vector<8x128xf32>
    tpu.vector_store %arg8[%c0_26, %c0_27], %35 {strides = array<i32>} : memref<8x128xf32, #tpu.memory_space<vmem>>, vector<8x128xf32>,
    return
  }
  func.func @transform_0(%arg0: i32) -> (i32, i32) {
    %c0_i32 = arith.constant 0 : i32
    %c0_i32_0 = arith.constant 0 : i32
    return %arg0, %c0_i32 : i32, i32
  }
  func.func @transform_1(%arg0: i32) -> (i32, i32, i32) {
    %c0_i32 = arith.constant 0 : i32
    %c0_i32_0 = arith.constant 0 : i32
    %c0_i32_1 = arith.constant 0 : i32
    %c0_i32_2 = arith.constant 0 : i32
    return %c0_i32, %c0_i32_0, %c0_i32_1 : i32, i32, i32
  }
  func.func @transform_2(%arg0: i32) -> (i32, i32) {
    %c0_i32 = arith.constant 0 : i32
    %c0_i32_0 = arith.constant 0 : i32
    %c0_i32_1 = arith.constant 0 : i32
    return %c0_i32, %c0_i32_0 : i32, i32
  }
  func.func @transform_3(%arg0: i32) -> (i32, i32) {
    %c0_i32 = arith.constant 0 : i32
    %c0_i32_0 = arith.constant 0 : i32
    %c0_i32_1 = arith.constant 0 : i32
    return %c0_i32, %c0_i32_0 : i32, i32
  }
  func.func @transform_4(%arg0: i32) -> (i32, i32) {
    %c0_i32 = arith.constant 0 : i32
    %c0_i32_0 = arith.constant 0 : i32
    %c0_i32_1 = arith.constant 0 : i32
    return %c0_i32, %c0_i32_0 : i32, i32
  }
  func.func @transform_5(%arg0: i32) -> (i32, i32) {
    %c0_i32 = arith.constant 0 : i32
    %c0_i32_0 = arith.constant 0 : i32
    %c0_i32_1 = arith.constant 0 : i32
    return %c0_i32, %c0_i32_0 : i32, i32
  }
  func.func @transform_6(%arg0: i32) -> (i32, i32) {
    %c0_i32 = arith.constant 0 : i32
    %c0_i32_0 = arith.constant 0 : i32
    %c0_i32_1 = arith.constant 0 : i32
    return %c0_i32, %c0_i32_0 : i32, i32
  }
  func.func @transform_7(%arg0: i32) -> (i32, i32) {
    %c0_i32 = arith.constant 0 : i32
    %c0_i32_0 = arith.constant 0 : i32
    return %arg0, %c0_i32 : i32, i32
  }
  func.func @transform_8(%arg0: i32) -> (i32, i32) {
    %c0_i32 = arith.constant 0 : i32
    %c0_i32_0 = arith.constant 0 : i32
    return %arg0, %c0_i32 : i32, i32
  }
}

</mosaic_0001>

<bundles_post_ra>
// kernel: _forward_jit.1
= control target key start
LH: loop header
LB: loop body
LE: loop exit
PB: predicated region body
PF: predicated region fallthrough
CT: control target
= control target key end

     0   :  { %s3757_s27 = smov 0   ;;  %s5410_s0 = inlined_call_operand.vmem [shape: bf16[288,128], index: 0, kind: input, shape index: {}]   ;;  %s5411_s1 = inlined_call_operand.vmem [shape: bf16[3,128,512], index: 1, kind: input, shape index: {}]   ;;  %s5412_s2 = inlined_call_operand.vmem [shape: f32[1,512], index: 2, kind: input, shape index: {}]   ;;  %s5413_s3 = inlined_call_operand.vmem [shape: bf16[8,144], index: 3, kind: input, shape index: {}]   ;;  %s5414_s4 = inlined_call_operand.vmem [shape: bf16[512,128], index: 4, kind: input, shape index: {}]   ;;  %s5415_s5 = inlined_call_operand.vmem [shape: bf16[128,128], index: 5, kind: input, shape index: {}]   ;;  %s5416_s6 = inlined_call_operand.vmem [shape: f32[1,128], index: 6, kind: input, shape index: {}]   ;;  %s5417_s7 = inlined_call_operand.vmem [shape: f32[16,128], index: 7, kind: output, shape index: {0}]   ;;  %s5418_s8 = inlined_call_operand.vmem [shape: f32[16,128], index: 8, kind: output, shape index: {1}]  }
   0x1 LB: > { %s3763_s28 = sadd.s32 4294967295, %s3707_s27   ;;  %p3201_p0 = scmp.ge.s32.totalorder %s3707_s27, 1  ;;  %s3707_s27 = sphi %s3757_s27, %s19_s27  }
   0x2   : > { %p266_p1 = scmp.lt.s32.totalorder %s3707_s27, 3 }
   0x4   : > { %p267_p2 = pnand %p3201_p0, %p266_p1 }
   0x6   : > { %270 = sbr.rel (%p267_p2) target bundleno = 1166 (0x48e), region = 48 }
   0xd   : > { %v3505_v0 = vld [vmem:[%s5411_s1 + $0x104] ss:$16 sps:$4 sm:$0xff]   ;;  %v3507_v1 = vld [vmem:[%s5411_s1 + $0x10c] ss:$16 sps:$4 sm:$0xff]   ;;  %v3709_v2 = vmov 0   ;;  %s303_s23 = smul.u32 18, %s3763_s28 }
   0xe   : > { %647 = vmatprep.mubr.bf16.mxu0 %v3709_v2  ;;  %770 = vmatprep.mubr.bf16.mxu1 %v3709_v2  ;;  %v3509_v3 = vld [vmem:[%s5411_s1 + $0x100] ss:$16 sps:$4 sm:$0xff]   ;;  %v3510_v4 = vld [vmem:[%s5411_s1 + $0x108] ss:$16 sps:$4 sm:$0xff]   ;;  %v3511_v5 = vld [vmem:[%s5411_s1 + $0x124] ss:$16 sps:$4 sm:$0xff]  }
   0xf   : > { %615 = vmatprep.subr.bf16.mxu0 %v3505_v0  ;;  %738 = vmatprep.subr.bf16.mxu1 %v3507_v1  ;;  %v3513_v6 = vld [vmem:[%s5411_s1 + $0x12c] ss:$16 sps:$4 sm:$0xff]   ;;  %v3515_v7 = vld [vmem:[%s5411_s1 + $0x120] ss:$16 sps:$4 sm:$0xff]   ;;  %v3516_v8 = vld [vmem:[%s5411_s1 + $0x128] ss:$16 sps:$4 sm:$0xff]  }
  0x10   : > { %616 = vmatpush1.bf16.msra.mxu0 %v3509_v3  ;;  %739 = vmatpush1.bf16.msra.mxu1 %v3510_v4  ;;  %v3517_v9 = vld [vmem:[%s5411_s1 + $0x144] ss:$16 sps:$4 sm:$0xff]   ;;  %v3519_v10 = vld [vmem:[%s5411_s1 + $0x14c] ss:$16 sps:$4 sm:$0xff]   ;;  %v3521_v11 = vld [vmem:[%s5411_s1 + $0x140] ss:$16 sps:$4 sm:$0xff]  }
  0x11   : > { %617 = vmatprep.subr.bf16.mxu0 %v3511_v5  ;;  %740 = vmatprep.subr.bf16.mxu1 %v3513_v6  ;;  %v3522_v12 = vld [vmem:[%s5411_s1 + $0x148] ss:$16 sps:$4 sm:$0xff]   ;;  %v3523_v13 = vld [vmem:[%s5411_s1 + $0x164] ss:$16 sps:$4 sm:$0xff]   ;;  %v3525_v14 = vld [vmem:[%s5411_s1 + $0x16c] ss:$16 sps:$4 sm:$0xff]  }
  0x12   : > { %p304_p3 = scmp.lt.s32.totalorder %s303_s23, 35  ;;  %v3527_v15 = vld [vmem:[%s5411_s1 + $0x160] ss:$16 sps:$4 sm:$0xff]   ;;  %v3528_v16 = vld [vmem:[%s5411_s1 + $0x168] ss:$16 sps:$4 sm:$0xff]   ;;  %vm933_vm0 = vcmask 1046528  }
  0x13   : > { %v3529_v17 = vld [vmem:[%s5411_s1 + $0x184] ss:$16 sps:$4 sm:$0xff]   ;;  %v3531_v18 = vld [vmem:[%s5411_s1 + $0x18c] ss:$16 sps:$4 sm:$0xff]   ;;  %v3533_v19 = vld [vmem:[%s5411_s1 + $0x180] ss:$16 sps:$4 sm:$0xff]  }
  0x14   : > { %618 = vmatpush1.bf16.msra.mxu0 %v3515_v7  ;;  %741 = vmatpush1.bf16.msra.mxu1 %v3516_v8  ;;  %s5568_s23 = smov (!%p304_p3, %s303_s23), 35  ;;  %v3534_v20 = vld [vmem:[%s5411_s1 + $0x188] ss:$16 sps:$4 sm:$0xff]   ;;  %v3535_v21 = vld [vmem:[%s5411_s1 + $0x1a4] ss:$16 sps:$4 sm:$0xff]   ;;  %vm2573_vm1 = vcmask 130048  }
  0x15   : > { %619 = vmatprep.subr.bf16.mxu0 %v3517_v9  ;;  %742 = vmatprep.subr.bf16.mxu1 %v3519_v10  ;;  %v3537_v22 = vld [vmem:[%s5411_s1 + $0x1ac] ss:$16 sps:$4 sm:$0xff]   ;;  %s3202_s13 = sshll.u32 %s5568_s23, 2  ;;  %v3539_v23 = vld [vmem:[%s5411_s1 + $0x1a0] ss:$16 sps:$4 sm:$0xff]   ;;  %vm2071_vm2 = vcmask 1045504  }
  0x16   : > { %v3540_v24 = vld [vmem:[%s5411_s1 + $0x1a8] ss:$16 sps:$4 sm:$0xff]   ;;  %v3541_v25 = vld [vmem:[%s5411_s1 + $0x1c4] ss:$16 sps:$4 sm:$0xff]   ;;  %s3848_s22 = scalar_lea.vmem %s5410_s0, %s3202_s13  ;;  %v3543_v26 = vld [vmem:[%s5411_s1 + $0x1cc] ss:$16 sps:$4 sm:$0xff]  }
  0x17   : > { %v3545_v27 = vld [vmem:[%s5411_s1 + $0x1c0] ss:$16 sps:$4 sm:$0xff]   ;;  %v3546_v28 = vld [vmem:[%s5411_s1 + $0x1c8] ss:$16 sps:$4 sm:$0xff]   ;;  %v3547_v29 = vld [vmem:[%s5411_s1 + $0x1e4] ss:$16 sps:$4 sm:$0xff]  }
  0x18   : > { %620 = vmatpush1.bf16.msra.mxu0 %v3521_v11  ;;  %743 = vmatpush1.bf16.msra.mxu1 %v3522_v12  ;;  %v3549_v30 = vld [vmem:[%s5411_s1 + $0x1ec] ss:$16 sps:$4 sm:$0xff]   ;;  %v3551_v31 = vld [vmem:[%s5411_s1 + $0x1e0] ss:$16 sps:$4 sm:$0xff]   ;;  %v3552_v32 = vld [vmem:[%s5411_s1 + $0x1e8] ss:$16 sps:$4 sm:$0xff]  }
  0x19   : > { %621 = vmatprep.subr.bf16.mxu0 %v3523_v13  ;;  %744 = vmatprep.subr.bf16.mxu1 %v3525_v14  ;;  %v3557_v33 = vld [vmem:[%s5411_s1 + $0x4] ss:$16 sps:$4 sm:$0xff]   ;;  %v3560_v34 = vld [vmem:[%s5411_s1 + $0xc] ss:$16 sps:$4 sm:$0xff]   ;;  %v3555_v36 = vld [vmem:[%s5411_s1] ss:$16 sps:$4 sm:$0xff]  }
  0x1a   : > { %v3878_v35 = vld [vmem:[%s3848_s22] sm:$0xff]   ;;  %v3558_v37 = vld [vmem:[%s5411_s1 + $0x8] ss:$16 sps:$4 sm:$0xff]   ;;  %v3567_v39 = vld [vmem:[%s5411_s1 + $0x2c] ss:$16 sps:$4 sm:$0xff]   ;;  %vm3711_vm3 = vmmov 0  }
  0x1b   : > { %v3564_v38 = vld [vmem:[%s5411_s1 + $0x24] ss:$16 sps:$4 sm:$0xff]   ;;  %v3562_v40 = vld [vmem:[%s5411_s1 + $0x20] ss:$16 sps:$4 sm:$0xff]   ;;  %v3565_v41 = vld [vmem:[%s5411_s1 + $0x28] ss:$16 sps:$4 sm:$0xff]  }
  0x1c   : > { %622 = vmatpush1.bf16.msra.mxu0 %v3527_v15  ;;  %745 = vmatpush1.bf16.msra.mxu1 %v3528_v16  ;;  %v3571_v42 = vld [vmem:[%s5411_s1 + $0x44] ss:$16 sps:$4 sm:$0xff]   ;;  %v3574_v43 = vld [vmem:[%s5411_s1 + $0x4c] ss:$16 sps:$4 sm:$0xff]   ;;  %v3569_v45 = vld [vmem:[%s5411_s1 + $0x40] ss:$16 sps:$4 sm:$0xff]  }
  0x1d   : > { %623 = vmatprep.subr.bf16.mxu0 %v3529_v17  ;;  %746 = vmatprep.subr.bf16.mxu1 %v3531_v18  ;;  %v3909_v44 = vld [vmem:[%s3848_s22 + $0x8] sm:$0xff]   ;;  %v3578_v47 = vld [vmem:[%s5411_s1 + $0x64] ss:$16 sps:$4 sm:$0xff]   ;;  %v3576_v49 = vld [vmem:[%s5411_s1 + $0x60] ss:$16 sps:$4 sm:$0xff]   ;;  %p309_p4 = scmp.lt.s32.totalorder %s3763_s28, 1 }
  0x1e   : > { %v3572_v46 = vld [vmem:[%s5411_s1 + $0x48] ss:$16 sps:$4 sm:$0xff]   ;;  %v3581_v48 = vld [vmem:[%s5411_s1 + $0x6c] ss:$16 sps:$4 sm:$0xff]   ;;  %v3585_v51 = vld [vmem:[%s5411_s1 + $0x84] ss:$16 sps:$4 sm:$0xff]  }
  0x1f   : > { %v3579_v50 = vld [vmem:[%s5411_s1 + $0x68] ss:$16 sps:$4 sm:$0xff]   ;;  %v3588_v52 = vld [vmem:[%s5411_s1 + $0x8c] ss:$16 sps:$4 sm:$0xff]   ;;  %v3940_v53 = vld [vmem:[%s3848_s22 + $0x10] sm:$0xff]   ;;  %s5570_s28 = smov (!%p309_p4, %s3763_s28), 1 }
  0x20   : > { %624 = vmatpush1.bf16.msra.mxu0 %v3533_v19  ;;  %747 = vmatpush1.bf16.msra.mxu1 %v3534_v20  ;;  %v3583_v54 = vld [vmem:[%s5411_s1 + $0x80] ss:$16 sps:$4 sm:$0xff]   ;;  %v3586_v55 = vld [vmem:[%s5411_s1 + $0x88] ss:$16 sps:$4 sm:$0xff]   ;;  %v3592_v56 = vld [vmem:[%s5411_s1 + $0xa4] ss:$16 sps:$4 sm:$0xff]  }
  0x21   : > { %625 = vmatprep.subr.bf16.mxu0 %v3535_v21  ;;  %748 = vmatprep.subr.bf16.mxu1 %v3537_v22  ;;  %v3595_v57 = vld [vmem:[%s5411_s1 + $0xac] ss:$16 sps:$4 sm:$0xff]   ;;  %v3590_v58 = vld [vmem:[%s5411_s1 + $0xa0] ss:$16 sps:$4 sm:$0xff]   ;;  %v3593_v59 = vld [vmem:[%s5411_s1 + $0xa8] ss:$16 sps:$4 sm:$0xff]  }
  0x22   : > { %v3599_v60 = vld [vmem:[%s5411_s1 + $0xc4] ss:$16 sps:$4 sm:$0xff]   ;;  %v3602_v61 = vld [vmem:[%s5411_s1 + $0xcc] ss:$16 sps:$4 sm:$0xff]   ;;  %v3597_v63 = vld [vmem:[%s5411_s1 + $0xc0] ss:$16 sps:$4 sm:$0xff]  }
  0x23   : > { %v3971_v62 = vld [vmem:[%s3848_s22 + $0x18] sm:$0xff]   ;;  %v3606_v1 = vld [vmem:[%s5411_s1 + $0xe4] ss:$16 sps:$4 sm:$0xff]   ;;  %v3604_v4 = vld [vmem:[%s5411_s1 + $0xe0] ss:$16 sps:$4 sm:$0xff]  }
  0x24   : > { %626 = vmatpush1.bf16.msra.mxu0 %v3539_v23  ;;  %749 = vmatpush1.bf16.msra.mxu1 %v3540_v24  ;;  %v3600_v0 = vld [vmem:[%s5411_s1 + $0xc8] ss:$16 sps:$4 sm:$0xff]   ;;  %v3609_v3 = vld [vmem:[%s5411_s1 + $0xec] ss:$16 sps:$4 sm:$0xff]   ;;  %v3612_v6 = vld [vmem:[%s5411_s1 + $0x204] ss:$16 sps:$4 sm:$0xff]  }
  0x25   : > { %627 = vmatprep.subr.bf16.mxu0 %v3541_v25  ;;  %750 = vmatprep.subr.bf16.mxu1 %v3543_v26  ;;  %v3607_v5 = vld [vmem:[%s5411_s1 + $0xe8] ss:$16 sps:$4 sm:$0xff]   ;;  %v3615_v7 = vld [vmem:[%s5411_s1 + $0x20c] ss:$16 sps:$4 sm:$0xff]   ;;  %v4002_v8 = vld [vmem:[%s3848_s22 + $0x20] sm:$0xff]  }
  0x26   : > { %v4009_v9 = vld [vmem:[%s3848_s22 + $0x28] sm:$0xff]   ;;  %v4016_v10 = vld [vmem:[%s3848_s22 + $0x30] sm:$0xff]   ;;  %v4023_v11 = vld [vmem:[%s3848_s22 + $0x38] sm:$0xff]  }
  0x27   : > { %v4030_v12 = vld [vmem:[%s3848_s22 + $0x40] sm:$0xff]   ;;  %v3613_v14 = vld [vmem:[%s5411_s1 + $0x208] ss:$16 sps:$4 sm:$0xff]   ;;  %v3621_v16 = vld [vmem:[%s5411_s1 + $0x22c] ss:$16 sps:$4 sm:$0xff]   ;;  %s3203_s22 = sshll.u32 %s5570_s28, 3 }
  0x28   : > { %628 = vmatpush1.bf16.msra.mxu0 %v3545_v27  ;;  %751 = vmatpush1.bf16.msra.mxu1 %v3546_v28  ;;  %v3610_v13 = vld [vmem:[%s5411_s1 + $0x200] ss:$16 sps:$4 sm:$0xff]   ;;  %v3618_v15 = vld [vmem:[%s5411_s1 + $0x224] ss:$16 sps:$4 sm:$0xff]   ;;  %v3619_v18 = vld [vmem:[%s5411_s1 + $0x228] ss:$16 sps:$4 sm:$0xff]   ;;  %s316_s17 = scalar_lea.vmem %s5418_s8, %s3203_s22  ;;  %s312_s21 = scalar_lea.vmem %s5417_s7, %s3203_s22 }
  0x29   : > { %629 = vmatprep.subr.bf16.mxu0 %v3547_v29  ;;  %752 = vmatprep.subr.bf16.mxu1 %v3549_v30  ;;  %v3616_v17 = vld [vmem:[%s5411_s1 + $0x220] ss:$16 sps:$4 sm:$0xff]   ;;  %v3624_v19 = vld [vmem:[%s5411_s1 + $0x244] ss:$16 sps:$4 sm:$0xff]   ;;  %v3627_v20 = vld [vmem:[%s5411_s1 + $0x24c] ss:$16 sps:$4 sm:$0xff]  }
  0x2a   : > { %v3622_v21 = vld [vmem:[%s5411_s1 + $0x240] ss:$16 sps:$4 sm:$0xff]   ;;  %v3625_v22 = vld [vmem:[%s5411_s1 + $0x248] ss:$16 sps:$4 sm:$0xff]   ;;  %v3630_v23 = vld [vmem:[%s5411_s1 + $0x264] ss:$16 sps:$4 sm:$0xff]  }
  0x2b   : > { %v3633_v24 = vld [vmem:[%s5411_s1 + $0x26c] ss:$16 sps:$4 sm:$0xff]   ;;  %v3628_v25 = vld [vmem:[%s5411_s1 + $0x260] ss:$16 sps:$4 sm:$0xff]   ;;  %v3631_v26 = vld [vmem:[%s5411_s1 + $0x268] ss:$16 sps:$4 sm:$0xff]  }
  0x2c   : > { %630 = vmatpush1.bf16.msra.mxu0 %v3551_v31  ;;  %753 = vmatpush1.bf16.msra.mxu1 %v3552_v32  ;;  %v3636_v27 = vld [vmem:[%s5411_s1 + $0x284] ss:$16 sps:$4 sm:$0xff]   ;;  %v3639_v28 = vld [vmem:[%s5411_s1 + $0x28c] ss:$16 sps:$4 sm:$0xff]   ;;  %v3634_v29 = vld [vmem:[%s5411_s1 + $0x280] ss:$16 sps:$4 sm:$0xff]  }
  0x2d   : > { %1314 = vmatprep.subr.bf16.mxu0 %v3557_v33  ;;  %1437 = vmatprep.subr.bf16.mxu1 %v3560_v34  ;;  %v3637_v30 = vld [vmem:[%s5411_s1 + $0x288] ss:$16 sps:$4 sm:$0xff]   ;;  %v3642_v31 = vld [vmem:[%s5411_s1 + $0x2a4] ss:$16 sps:$4 sm:$0xff]   ;;  %v3645_v32 = vld [vmem:[%s5411_s1 + $0x2ac] ss:$16 sps:$4 sm:$0xff]  }
  0x2e   : > { %v3640_v33 = vld [vmem:[%s5411_s1 + $0x2a0] ss:$16 sps:$4 sm:$0xff]   ;;  %v3643_v34 = vld [vmem:[%s5411_s1 + $0x2a8] ss:$16 sps:$4 sm:$0xff]  }
  0x2f   : > { %648 = vmatmul.mubr.bf16.vlgmr.msra.gmra.mrb[0].mxu0 %v3878_v35  ;;  %771 = vmatmul.mubr.bf16.vlgmr.msra.gmra.mrb[0].mxu1 %v3878_v35 }
  0x30   : > { %657 = vmatprep.mubr.bf16.mxu0 %v3709_v2  ;;  %780 = vmatprep.mubr.bf16.mxu1 %v3709_v2 }
  0x31   : > { %1315 = vmatpush1.bf16.msra.mxu0 %v3555_v36  ;;  %1438 = vmatpush1.bf16.msra.mxu1 %v3558_v37  ;;  %v3648_v36 = vld [vmem:[%s5411_s1 + $0x2c4] ss:$16 sps:$4 sm:$0xff]   ;;  %v3651_v37 = vld [vmem:[%s5411_s1 + $0x2cc] ss:$16 sps:$4 sm:$0xff]  }
  0x32   : > { %1316 = vmatprep.subr.bf16.mxu0 %v3564_v38  ;;  %1439 = vmatprep.subr.bf16.mxu1 %v3567_v39  ;;  %v3646_v38 = vld [vmem:[%s5411_s1 + $0x2c0] ss:$16 sps:$4 sm:$0xff]   ;;  %v3649_v39 = vld [vmem:[%s5411_s1 + $0x2c8] ss:$16 sps:$4 sm:$0xff]  }
  0x35   : > { %1317 = vmatpush1.bf16.msra.mxu0 %v3562_v40  ;;  %1440 = vmatpush1.bf16.msra.mxu1 %v3565_v41  ;;  %v3654_v40 = vld [vmem:[%s5411_s1 + $0x2e4] ss:$16 sps:$4 sm:$0xff]   ;;  %v3657_v41 = vld [vmem:[%s5411_s1 + $0x2ec] ss:$16 sps:$4 sm:$0xff]  }
  0x36   : > { %1318 = vmatprep.subr.bf16.mxu0 %v3571_v42  ;;  %1441 = vmatprep.subr.bf16.mxu1 %v3574_v43  ;;  %v3652_v42 = vld [vmem:[%s5411_s1 + $0x2e0] ss:$16 sps:$4 sm:$0xff]   ;;  %v3655_v43 = vld [vmem:[%s5411_s1 + $0x2e8] ss:$16 sps:$4 sm:$0xff]  }
  0x37   : > { %658 = vmatmul.mubr.bf16.gmra.mrb[4].mxu0 %v3909_v44  ;;  %781 = vmatmul.mubr.bf16.gmra.mrb[4].mxu1 %v3909_v44 }
  0x38   : > { %667 = vmatprep.mubr.bf16.mxu0 %v3709_v2  ;;  %790 = vmatprep.mubr.bf16.mxu1 %v3709_v2 }
  0x39   : > { %1319 = vmatpush1.bf16.msra.mxu0 %v3569_v45  ;;  %1442 = vmatpush1.bf16.msra.mxu1 %v3572_v46 }
  0x3a   : > { %1320 = vmatprep.subr.bf16.mxu0 %v3578_v47  ;;  %1443 = vmatprep.subr.bf16.mxu1 %v3581_v48 }
  0x3d   : > { %1321 = vmatpush1.bf16.msra.mxu0 %v3576_v49  ;;  %1444 = vmatpush1.bf16.msra.mxu1 %v3579_v50 }
  0x3e   : > { %1322 = vmatprep.subr.bf16.mxu0 %v3585_v51  ;;  %1445 = vmatprep.subr.bf16.mxu1 %v3588_v52 }
  0x3f   : > { %668 = vmatmul.mubr.bf16.gmra.mrb[8].mxu0 %v3940_v53  ;;  %791 = vmatmul.mubr.bf16.gmra.mrb[8].mxu1 %v3940_v53 }
  0x40   : > { %677 = vmatprep.mubr.bf16.mxu0 %v3709_v2  ;;  %800 = vmatprep.mubr.bf16.mxu1 %v3709_v2 }
  0x41   : > { %1323 = vmatpush1.bf16.msra.mxu0 %v3583_v54  ;;  %1446 = vmatpush1.bf16.msra.mxu1 %v3586_v55 }
  0x42   : > { %1324 = vmatprep.subr.bf16.mxu0 %v3592_v56  ;;  %1447 = vmatprep.subr.bf16.mxu1 %v3595_v57 }
  0x45   : > { %1325 = vmatpush1.bf16.msra.mxu0 %v3590_v58  ;;  %1448 = vmatpush1.bf16.msra.mxu1 %v3593_v59 }
  0x46   : > { %1326 = vmatprep.subr.bf16.mxu0 %v3599_v60  ;;  %1449 = vmatprep.subr.bf16.mxu1 %v3602_v61 }
  0x47   : > { %678 = vmatmul.mubr.bf16.gmra.mrb[12].mxu0 %v3971_v62  ;;  %801 = vmatmul.mubr.bf16.gmra.mrb[12].mxu1 %v3971_v62 }
  0x48   : > { %687 = vmatprep.mubr.bf16.mxu0 %v3709_v2  ;;  %810 = vmatprep.mubr.bf16.mxu1 %v3709_v2 }
  0x49   : > { %1327 = vmatpush1.bf16.msra.mxu0 %v3597_v63  ;;  %1450 = vmatpush1.bf16.msra.mxu1 %v3600_v0 }
  0x4a   : > { %1328 = vmatprep.subr.bf16.mxu0 %v3606_v1  ;;  %1451 = vmatprep.subr.bf16.mxu1 %v3609_v3 }
  0x4d   : > { %1329 = vmatpush1.bf16.msra.mxu0 %v3604_v4  ;;  %1452 = vmatpush1.bf16.msra.mxu1 %v3607_v5 }
  0x4e   : > { %1753 = vmatprep.subr.bf16.mxu0 %v3612_v6  ;;  %1876 = vmatprep.subr.bf16.mxu1 %v3615_v7 }
  0x4f   : > { %688 = vmatmul.mubr.bf16.gmra.mrb[16].mxu0 %v4002_v8  ;;  %811 = vmatmul.mubr.bf16.gmra.mrb[16].mxu1 %v4002_v8 }
  0x50   : > { %697 = vmatprep.mubr.bf16.mxu0 %v3709_v2  ;;  %820 = vmatprep.mubr.bf16.mxu1 %v3709_v2 }
  0x57   : > { %698 = vmatmul.mubr.bf16.gmra.mrb[20].mxu0 %v4009_v9  ;;  %821 = vmatmul.mubr.bf16.gmra.mrb[20].mxu1 %v4009_v9 }
  0x58   : > { %707 = vmatprep.mubr.bf16.mxu0 %v3709_v2  ;;  %830 = vmatprep.mubr.bf16.mxu1 %v3709_v2 }
  0x5f   : > { %708 = vmatmul.mubr.bf16.gmra.mrb[24].mxu0 %v4016_v10  ;;  %831 = vmatmul.mubr.bf16.gmra.mrb[24].mxu1 %v4016_v10 }
  0x60   : > { %717 = vmatprep.mubr.bf16.mxu0 %v3709_v2  ;;  %840 = vmatprep.mubr.bf16.mxu1 %v3709_v2 }
  0x67   : > { %718 = vmatmul.mubr.bf16.gmra.mrb[28].mxu0 %v4023_v11  ;;  %841 = vmatmul.mubr.bf16.gmra.mrb[28].mxu1 %v4023_v11 }
  0x68   : > { %727 = vmatprep.mubr.bf16.mxu0 %v3709_v2  ;;  %850 = vmatprep.mubr.bf16.mxu1 %v3709_v2 }
  0x6f   : > { %728 = vmatmul.mubr.bf16.gmra.mrb[32].mxu0 %v4030_v12  ;;  %851 = vmatmul.mubr.bf16.gmra.mrb[32].mxu1 %v4030_v12 }
  0x70   : > { %1346 = vmatprep.mubr.bf16.mxu0 %v3709_v2  ;;  %1469 = vmatprep.mubr.bf16.mxu1 %v3709_v2 }
  0x77   : > { %1347 = vmatmul.mubr.bf16.vlgmr.msra.gmra.mrb[36].mxu0 %v3878_v35  ;;  %1470 = vmatmul.mubr.bf16.vlgmr.msra.gmra.mrb[36].mxu1 %v3878_v35 }
  0x78   : > { %1356 = vmatprep.mubr.bf16.mxu0 %v3709_v2  ;;  %1479 = vmatprep.mubr.bf16.mxu1 %v3709_v2 }
  0x79   : > { %1754 = vmatpush1.bf16.msra.mxu0 %v3610_v13  ;;  %1877 = vmatpush1.bf16.msra.mxu1 %v3613_v14 }
  0x7a   : > { %1755 = vmatprep.subr.bf16.mxu0 %v3618_v15  ;;  %1878 = vmatprep.subr.bf16.mxu1 %v3621_v16 }
  0x7d   : > { %1756 = vmatpush1.bf16.msra.mxu0 %v3616_v17  ;;  %1879 = vmatpush1.bf16.msra.mxu1 %v3619_v18 }
  0x7e   : > { %1757 = vmatprep.subr.bf16.mxu0 %v3624_v19  ;;  %1880 = vmatprep.subr.bf16.mxu1 %v3627_v20 }
  0x7f   : > { %1357 = vmatmul.mubr.bf16.gmra.mrb[40].mxu0 %v3909_v44  ;;  %1480 = vmatmul.mubr.bf16.gmra.mrb[40].mxu1 %v3909_v44 }
  0x80   : > { %1366 = vmatprep.mubr.bf16.mxu0 %v3709_v2  ;;  %1489 = vmatprep.mubr.bf16.mxu1 %v3709_v2 }
  0x81   : > { %1758 = vmatpush1.bf16.msra.mxu0 %v3622_v21  ;;  %1881 = vmatpush1.bf16.msra.mxu1 %v3625_v22 }
  0x82   : > { %1759 = vmatprep.subr.bf16.mxu0 %v3630_v23  ;;  %1882 = vmatprep.subr.bf16.mxu1 %v3633_v24 }
  0x85   : > { %1760 = vmatpush1.bf16.msra.mxu0 %v3628_v25  ;;  %1883 = vmatpush1.bf16.msra.mxu1 %v3631_v26 }
  0x86   : > { %1761 = vmatprep.subr.bf16.mxu0 %v3636_v27  ;;  %1884 = vmatprep.subr.bf16.mxu1 %v3639_v28 }
  0x87   : > { %1367 = vmatmul.mubr.bf16.gmra.mrb[44].mxu0 %v3940_v53  ;;  %1490 = vmatmul.mubr.bf16.gmra.mrb[44].mxu1 %v3940_v53 }
  0x88   : > { %1376 = vmatprep.mubr.bf16.mxu0 %v3709_v2  ;;  %1499 = vmatprep.mubr.bf16.mxu1 %v3709_v2 }
  0x89   : > { %1762 = vmatpush1.bf16.msra.mxu0 %v3634_v29  ;;  %1885 = vmatpush1.bf16.msra.mxu1 %v3637_v30 }
  0x8a   : > { %1763 = vmatprep.subr.bf16.mxu0 %v3642_v31  ;;  %1886 = vmatprep.subr.bf16.mxu1 %v3645_v32 }
  0x8d   : > { %1764 = vmatpush1.bf16.msra.mxu0 %v3640_v33  ;;  %1887 = vmatpush1.bf16.msra.mxu1 %v3643_v34 }
  0x8e   : > { %1765 = vmatprep.subr.bf16.mxu0 %v3648_v36  ;;  %1888 = vmatprep.subr.bf16.mxu1 %v3651_v37 }
  0x8f   : > { %1377 = vmatmul.mubr.bf16.gmra.mrb[48].mxu0 %v3971_v62  ;;  %1500 = vmatmul.mubr.bf16.gmra.mrb[48].mxu1 %v3971_v62 }
  0x90   : > { %1386 = vmatprep.mubr.bf16.mxu0 %v3709_v2  ;;  %1509 = vmatprep.mubr.bf16.mxu1 %v3709_v2 }
  0x91   : > { %1766 = vmatpush1.bf16.msra.mxu0 %v3646_v38  ;;  %1889 = vmatpush1.bf16.msra.mxu1 %v3649_v39 }
  0x92   : > { %1767 = vmatprep.subr.bf16.mxu0 %v3654_v40  ;;  %1890 = vmatprep.subr.bf16.mxu1 %v3657_v41 }
  0x95   : > { %1768 = vmatpush1.bf16.msra.mxu0 %v3652_v42  ;;  %1891 = vmatpush1.bf16.msra.mxu1 %v3655_v43 }
  0x97   : > { %1387 = vmatmul.mubr.bf16.gmra.mrb[52].mxu0 %v4002_v8  ;;  %1510 = vmatmul.mubr.bf16.gmra.mrb[52].mxu1 %v4002_v8 }
  0x98   : > { %1396 = vmatprep.mubr.bf16.mxu0 %v3709_v2  ;;  %1519 = vmatprep.mubr.bf16.mxu1 %v3709_v2 }
  0x9f   : > { %1397 = vmatmul.mubr.bf16.gmra.mrb[56].mxu0 %v4009_v9  ;;  %1520 = vmatmul.mubr.bf16.gmra.mrb[56].mxu1 %v4009_v9 }
  0xa0   : > { %1406 = vmatprep.mubr.bf16.mxu0 %v3709_v2  ;;  %1529 = vmatprep.mubr.bf16.mxu1 %v3709_v2 }
  0xa7   : > { %1407 = vmatmul.mubr.bf16.gmra.mrb[60].mxu0 %v4016_v10  ;;  %1530 = vmatmul.mubr.bf16.gmra.mrb[60].mxu1 %v4016_v10 }
  0xa8   : > { %1416 = vmatprep.mubr.bf16.mxu0 %v3709_v2  ;;  %1539 = vmatprep.mubr.bf16.mxu1 %v3709_v2 }
  0xaf   : > { %1417 = vmatmul.mubr.bf16.gmra.mrb[64].mxu0 %v4023_v11  ;;  %1540 = vmatmul.mubr.bf16.gmra.mrb[64].mxu1 %v4023_v11 }
  0xb0   : > { %1426 = vmatprep.mubr.bf16.mxu0 %v3709_v2  ;;  %1549 = vmatprep.mubr.bf16.mxu1 %v3709_v2 }
  0xb7   : > { %1427 = vmatmul.mubr.bf16.gmra.mrb[68].mxu0 %v4030_v12  ;;  %1550 = vmatmul.mubr.bf16.gmra.mrb[68].mxu1 %v4030_v12 }
  0xb8   : > { %1785 = vmatprep.mubr.bf16.mxu0 %v3709_v2  ;;  %1908 = vmatprep.mubr.bf16.mxu1 %v3709_v2 }
  0xbf   : > { %1786 = vmatmul.mubr.bf16.vlgmr.msra.gmra.mrb[72].mxu0 %v3878_v35  ;;  %1909 = vmatmul.mubr.bf16.vlgmr.msra.gmra.mrb[72].mxu1 %v3878_v35 }
  0xc0   : > { %1795 = vmatprep.mubr.bf16.mxu0 %v3709_v2  ;;  %1918 = vmatprep.mubr.bf16.mxu1 %v3709_v2 }
  0xc7   : > { %1796 = vmatmul.mubr.bf16.gmra.mrb[76].mxu0 %v3909_v44  ;;  %1919 = vmatmul.mubr.bf16.gmra.mrb[76].mxu1 %v3909_v44 }
  0xc8   : > { %1805 = vmatprep.mubr.bf16.mxu0 %v3709_v2  ;;  %1928 = vmatprep.mubr.bf16.mxu1 %v3709_v2 }
  0xcf   : > { %1806 = vmatmul.mubr.bf16.gmra.mrb[80].mxu0 %v3940_v53  ;;  %1929 = vmatmul.mubr.bf16.gmra.mrb[80].mxu1 %v3940_v53 }
  0xd0   : > { %1815 = vmatprep.mubr.bf16.mxu0 %v3709_v2  ;;  %1938 = vmatprep.mubr.bf16.mxu1 %v3709_v2 }
  0xd7   : > { %1816 = vmatmul.mubr.bf16.gmra.mrb[84].mxu0 %v3971_v62  ;;  %1939 = vmatmul.mubr.bf16.gmra.mrb[84].mxu1 %v3971_v62 }
  0xd8   : > { %1825 = vmatprep.mubr.bf16.mxu0 %v3709_v2  ;;  %1948 = vmatprep.mubr.bf16.mxu1 %v3709_v2 }
  0xdf   : > { %1826 = vmatmul.mubr.bf16.gmra.mrb[88].mxu0 %v4002_v8  ;;  %1949 = vmatmul.mubr.bf16.gmra.mrb[88].mxu1 %v4002_v8 }
  0xe0   : > { %1835 = vmatprep.mubr.bf16.mxu0 %v3709_v2  ;;  %1958 = vmatprep.mubr.bf16.mxu1 %v3709_v2 }
  0xe7   : > { %1836 = vmatmul.mubr.bf16.gmra.mrb[92].mxu0 %v4009_v9  ;;  %1959 = vmatmul.mubr.bf16.gmra.mrb[92].mxu1 %v4009_v9 }
  0xe8   : > { %1845 = vmatprep.mubr.bf16.mxu0 %v3709_v2  ;;  %1968 = vmatprep.mubr.bf16.mxu1 %v3709_v2 }
  0xef   : > { %1846 = vmatmul.mubr.bf16.gmra.mrb[96].mxu0 %v4016_v10  ;;  %1969 = vmatmul.mubr.bf16.gmra.mrb[96].mxu1 %v4016_v10 }
  0xf0   : > { %1855 = vmatprep.mubr.bf16.mxu0 %v3709_v2  ;;  %1978 = vmatprep.mubr.bf16.mxu1 %v3709_v2 }
  0xf7   : > { %1856 = vmatmul.mubr.bf16.gmra.mrb[100].mxu0 %v4023_v11  ;;  %1979 = vmatmul.mubr.bf16.gmra.mrb[100].mxu1 %v4023_v11 }
  0xf8   : > { %1865 = vmatprep.mubr.bf16.mxu0 %v3709_v2  ;;  %1988 = vmatprep.mubr.bf16.mxu1 %v3709_v2 }
  0xff   : > { %1866 = vmatmul.mubr.bf16.gmra.mrb[104].mxu0 %v4030_v12  ;;  %1989 = vmatmul.mubr.bf16.gmra.mrb[104].mxu1 %v4030_v12 }
 0x102   : > { %v4196_v35 = vpop.f32.mrb[0].mxu0  ;;  %v4198_v44 = vpop.f32.mrb[0].mxu1 }
 0x103   : > { %v4200_v45 = vpop.f32.mrb[1].mxu0  ;;  %v4202_v46 = vpop.f32.mrb[1].mxu1  ;;  %v5422_v49 = vrot.slane %v4196_v35, 1  ;;  %v5421_v50 = vrot.slane %v4198_v44, 1 }
 0x104   : > { %v653_v47 = vpop.f32.mrb[2].mxu0  ;;  %v776_v48 = vpop.f32.mrb[2].mxu1  ;;  %v5420_v54 = vrot.slane %v4200_v45, 1  ;;  %v5419_v55 = vrot.slane %v4202_v46, 1 }
 0x105   : > { %v935_v2 = vrot.slane %v653_v47, 1  ;;  %v941_v51 = vrot.slane %v776_v48, 1  ;;  %v655_v52 = vpop.f32.mrb[3].mxu0  ;;  %v778_v53 = vpop.f32.mrb[3].mxu1 }
 0x106   : > { %v938_v56 = vrot.slane %v655_v52, 1  ;;  %v944_v57 = vrot.slane %v778_v53, 1 }
 0x107   : > { %v4211_v58 = vsel %vm933_vm0, %v5422_v49, %v935_v2  ;;  %v4216_v59 = vsel %vm933_vm0, %v5421_v50, %v941_v51 }
 0x108   : > { %v4221_v60 = vsel %vm933_vm0, %v5420_v54, %v938_v56  ;;  %v4226_v61 = vsel %vm933_vm0, %v5419_v55, %v944_v57 }
 0x10a   : > { %v659_v62 = vpop.f32.mrb[4].mxu0  ;;  %v782_v63 = vpop.f32.mrb[4].mxu1 }
 0x10b   : > { %v946_v0 = vrot.slane %v659_v62, 1  ;;  %v950_v1 = vrot.slane %v782_v63, 1  ;;  %v661_v3 = vpop.f32.mrb[5].mxu0  ;;  %v784_v4 = vpop.f32.mrb[5].mxu1 }
 0x10c   : > { %v948_v5 = vrot.slane %v661_v3, 1  ;;  %v952_v6 = vrot.slane %v784_v4, 1  ;;  %v663_v7 = vpop.f32.mrb[6].mxu0  ;;  %v786_v8 = vpop.f32.mrb[6].mxu1 }
 0x10d   : > { %v954_v9 = vrot.slane %v663_v7, 1  ;;  %v958_v10 = vrot.slane %v786_v8, 1  ;;  %v665_v11 = vpop.f32.mrb[7].mxu0  ;;  %v788_v12 = vpop.f32.mrb[7].mxu1  ;;  %v4229_v13 = vsel %vm933_vm0, %v935_v2, %v946_v0  ;;  %v4232_v14 = vsel %vm933_vm0, %v941_v51, %v950_v1 }
 0x10e   : > { %v956_v15 = vrot.slane %v665_v11, 1  ;;  %v960_v16 = vrot.slane %v788_v12, 1  ;;  %v4235_v17 = vsel %vm933_vm0, %v938_v56, %v948_v5  ;;  %v4238_v18 = vsel %vm933_vm0, %v944_v57, %v952_v6 }
 0x10f   : > { %v4241_v19 = vsel %vm933_vm0, %v946_v0, %v954_v9  ;;  %v4244_v20 = vsel %vm933_vm0, %v950_v1, %v958_v10 }
 0x110   : > { %v4247_v21 = vsel %vm933_vm0, %v948_v5, %v956_v15  ;;  %v4250_v22 = vsel %vm933_vm0, %v952_v6, %v960_v16 }
 0x112   : > { %v669_v23 = vpop.f32.mrb[8].mxu0  ;;  %v792_v24 = vpop.f32.mrb[8].mxu1 }
 0x113   : > { %v962_v25 = vrot.slane %v669_v23, 1  ;;  %v966_v26 = vrot.slane %v792_v24, 1  ;;  %v671_v27 = vpop.f32.mrb[9].mxu0  ;;  %v794_v28 = vpop.f32.mrb[9].mxu1 }
 0x114   : > { %v964_v29 = vrot.slane %v671_v27, 1  ;;  %v968_v30 = vrot.slane %v794_v28, 1  ;;  %v673_v31 = vpop.f32.mrb[10].mxu0  ;;  %v796_v32 = vpop.f32.mrb[10].mxu1 }
 0x115   : > { %v970_v33 = vrot.slane %v673_v31, 1  ;;  %v974_v34 = vrot.slane %v796_v32, 1  ;;  %v675_v36 = vpop.f32.mrb[11].mxu0  ;;  %v798_v37 = vpop.f32.mrb[11].mxu1  ;;  %v4253_v38 = vsel %vm933_vm0, %v954_v9, %v962_v25  ;;  %v4256_v39 = vsel %vm933_vm0, %v958_v10, %v966_v26 }
 0x116   : > { %v972_v40 = vrot.slane %v675_v36, 1  ;;  %v976_v41 = vrot.slane %v798_v37, 1  ;;  %v4259_v42 = vsel %vm933_vm0, %v956_v15, %v964_v29  ;;  %v4262_v43 = vsel %vm933_vm0, %v960_v16, %v968_v30 }
 0x117   : > { %v4265_v47 = vsel %vm933_vm0, %v962_v25, %v970_v33  ;;  %v4268_v48 = vsel %vm933_vm0, %v966_v26, %v974_v34 }
 0x118   : > { %v4271_v2 = vsel %vm933_vm0, %v964_v29, %v972_v40  ;;  %v4274_v51 = vsel %vm933_vm0, %v968_v30, %v976_v41 }
 0x11a   : > { %v679_v52 = vpop.f32.mrb[12].mxu0  ;;  %v802_v53 = vpop.f32.mrb[12].mxu1 }
 0x11b   : > { %v978_v56 = vrot.slane %v679_v52, 1  ;;  %v982_v57 = vrot.slane %v802_v53, 1  ;;  %v681_v62 = vpop.f32.mrb[13].mxu0  ;;  %v804_v63 = vpop.f32.mrb[13].mxu1 }
 0x11c   : > { %v980_v0 = vrot.slane %v681_v62, 1  ;;  %v984_v1 = vrot.slane %v804_v63, 1  ;;  %v683_v3 = vpop.f32.mrb[14].mxu0  ;;  %v806_v4 = vpop.f32.mrb[14].mxu1 }
 0x11d   : > { %v986_v5 = vrot.slane %v683_v3, 1  ;;  %v990_v6 = vrot.slane %v806_v4, 1  ;;  %v685_v7 = vpop.f32.mrb[15].mxu0  ;;  %v808_v8 = vpop.f32.mrb[15].mxu1  ;;  %v4277_v9 = vsel %vm933_vm0, %v970_v33, %v978_v56  ;;  %v4280_v10 = vsel %vm933_vm0, %v974_v34, %v982_v57 }
 0x11e   : > { %v988_v11 = vrot.slane %v685_v7, 1  ;;  %v992_v12 = vrot.slane %v808_v8, 1  ;;  %v4283_v15 = vsel %vm933_vm0, %v972_v40, %v980_v0  ;;  %v4286_v16 = vsel %vm933_vm0, %v976_v41, %v984_v1 }
 0x11f   : > { %v4289_v23 = vsel %vm933_vm0, %v978_v56, %v986_v5  ;;  %v4292_v24 = vsel %vm933_vm0, %v982_v57, %v990_v6 }
 0x120   : > { %v4295_v25 = vsel %vm933_vm0, %v980_v0, %v988_v11  ;;  %v4298_v26 = vsel %vm933_vm0, %v984_v1, %v992_v12 }
 0x122   : > { %v689_v27 = vpop.f32.mrb[16].mxu0  ;;  %v812_v28 = vpop.f32.mrb[16].mxu1 }
 0x123   : > { %v994_v29 = vrot.slane %v689_v27, 1  ;;  %v998_v30 = vrot.slane %v812_v28, 1  ;;  %v691_v31 = vpop.f32.mrb[17].mxu0  ;;  %v814_v32 = vpop.f32.mrb[17].mxu1 }
 0x124   : > { %v996_v33 = vrot.slane %v691_v31, 1  ;;  %v1000_v34 = vrot.slane %v814_v32, 1  ;;  %v693_v36 = vpop.f32.mrb[18].mxu0  ;;  %v816_v37 = vpop.f32.mrb[18].mxu1 }
 0x125   : > { %v1002_v40 = vrot.slane %v693_v36, 1  ;;  %v1006_v41 = vrot.slane %v816_v37, 1  ;;  %v695_v52 = vpop.f32.mrb[19].mxu0  ;;  %v818_v53 = vpop.f32.mrb[19].mxu1  ;;  %v4301_v56 = vsel %vm933_vm0, %v986_v5, %v994_v29  ;;  %v4304_v57 = vsel %vm933_vm0, %v990_v6, %v998_v30 }
 0x126   : > { %v1004_v62 = vrot.slane %v695_v52, 1  ;;  %v1008_v63 = vrot.slane %v818_v53, 1  ;;  %v4307_v0 = vsel %vm933_vm0, %v988_v11, %v996_v33  ;;  %v4310_v1 = vsel %vm933_vm0, %v992_v12, %v1000_v34 }
 0x127   : > { %v4313_v3 = vsel %vm933_vm0, %v994_v29, %v1002_v40  ;;  %v4316_v4 = vsel %vm933_vm0, %v998_v30, %v1006_v41 }
 0x128   : > { %v4319_v5 = vsel %vm933_vm0, %v996_v33, %v1004_v62  ;;  %v4322_v6 = vsel %vm933_vm0, %v1000_v34, %v1008_v63 }
 0x12a   : > { %v699_v7 = vpop.f32.mrb[20].mxu0  ;;  %v822_v8 = vpop.f32.mrb[20].mxu1 }
 0x12b   : > { %v1010_v27 = vrot.slane %v699_v7, 1  ;;  %v1014_v11 = vrot.slane %v822_v8, 1  ;;  %v701_v28 = vpop.f32.mrb[21].mxu0  ;;  %v824_v31 = vpop.f32.mrb[21].mxu1 }
 0x12c   : > { %v1012_v12 = vrot.slane %v701_v28, 1  ;;  %v1016_v32 = vrot.slane %v824_v31, 1  ;;  %v703_v36 = vpop.f32.mrb[22].mxu0  ;;  %v826_v29 = vpop.f32.mrb[22].mxu1 }
 0x12d   : > { %v1018_v37 = vrot.slane %v703_v36, 1  ;;  %v1022_v52 = vrot.slane %v826_v29, 1  ;;  %v705_v30 = vpop.f32.mrb[23].mxu0  ;;  %v828_v53 = vpop.f32.mrb[23].mxu1  ;;  %v4325_v33 = vsel %vm933_vm0, %v1002_v40, %v1010_v27  ;;  %v4328_v34 = vsel %vm933_vm0, %v1006_v41, %v1014_v11 }
 0x12e   : > { %v1020_v55 = vrot.slane %v705_v30, 1  ;;  %v1024_v54 = vrot.slane %v828_v53, 1  ;;  %v4331_v7 = vsel %vm933_vm0, %v1004_v62, %v1012_v12  ;;  %v4334_v8 = vsel %vm933_vm0, %v1008_v63, %v1016_v32 }
 0x12f   : > { %5429 = vst [vmem:[#allocation2_spill] sm:$0xff] %v4331_v7  ;;  %5430 = vst [vmem:[#allocation3_spill] sm:$0xff] %v4334_v8  ;;  %v4337_v28 = vsel %vm933_vm0, %v1010_v27, %v1018_v37  ;;  %v4340_v31 = vsel %vm933_vm0, %v1014_v11, %v1022_v52 }
 0x130   : > { %5431 = vst [vmem:[#allocation4_spill] sm:$0xff] %v4337_v28  ;;  %5432 = vst [vmem:[#allocation5_spill] sm:$0xff] %v4340_v31  ;;  %v4343_v40 = vsel %vm933_vm0, %v1012_v12, %v1020_v55  ;;  %v4346_v41 = vsel %vm933_vm0, %v1016_v32, %v1024_v54 }
 0x131   : > { %5433 = vst [vmem:[#allocation6_spill] sm:$0xff] %v4343_v40  ;;  %5434 = vst [vmem:[#allocation7_spill] sm:$0xff] %v4346_v41 }
 0x132   : > { %v709_v36 = vpop.f32.mrb[24].mxu0  ;;  %v832_v29 = vpop.f32.mrb[24].mxu1 }
 0x133   : > { %v1026_v30 = vrot.slane %v709_v36, 1  ;;  %v1030_v62 = vrot.slane %v832_v29, 1  ;;  %v711_v53 = vpop.f32.mrb[25].mxu0  ;;  %v834_v50 = vpop.f32.mrb[25].mxu1 }
 0x134   : > { %v1028_v63 = vrot.slane %v711_v53, 1  ;;  %v1032_v49 = vrot.slane %v834_v50, 1  ;;  %v713_v8 = vpop.f32.mrb[26].mxu0  ;;  %v836_v27 = vpop.f32.mrb[26].mxu1 }
 0x135   : > { %v1034_v28 = vrot.slane %v713_v8, 1  ;;  %v1038_v7 = vrot.slane %v836_v27, 1  ;;  %v715_v11 = vpop.f32.mrb[27].mxu0  ;;  %v838_v31 = vpop.f32.mrb[27].mxu1  ;;  %v4349_v12 = vsel %vm933_vm0, %v1018_v37, %v1026_v30  ;;  %v4352_v32 = vsel %vm933_vm0, %v1022_v52, %v1030_v62 }
 0x136   : > { %5435 = vst [vmem:[#allocation8_spill] sm:$0xff] %v4349_v12  ;;  %5436 = vst [vmem:[#allocation9_spill] sm:$0xff] %v4352_v32  ;;  %v1036_v41 = vrot.slane %v715_v11, 1  ;;  %v1040_v40 = vrot.slane %v838_v31, 1  ;;  %v4355_v36 = vsel %vm933_vm0, %v1020_v55, %v1028_v63  ;;  %v4358_v29 = vsel %vm933_vm0, %v1024_v54, %v1032_v49 }
 0x137   : > { %5437 = vst [vmem:[#allocation10_spill] sm:$0xff] %v4355_v36  ;;  %5438 = vst [vmem:[#allocation11_spill] sm:$0xff] %v4358_v29  ;;  %v4361_v50 = vsel %vm933_vm0, %v1026_v30, %v1034_v28  ;;  %v4364_v8 = vsel %vm933_vm0, %v1030_v62, %v1038_v7 }
 0x138   : > { %5439 = vst [vmem:[#allocation12_spill] sm:$0xff] %v4361_v50  ;;  %5440 = vst [vmem:[#allocation13_spill] sm:$0xff] %v4364_v8  ;;  %v4367_v37 = vsel %vm933_vm0, %v1028_v63, %v1036_v41  ;;  %v4370_v52 = vsel %vm933_vm0, %v1032_v49, %v1040_v40 }
 0x139   : > { %5441 = vst [vmem:[#allocation14_spill] sm:$0xff] %v4367_v37  ;;  %5442 = vst [vmem:[#allocation15_spill] sm:$0xff] %v4370_v52 }
 0x13a   : > { %v719_v53 = vpop.f32.mrb[28].mxu0  ;;  %v842_v31 = vpop.f32.mrb[28].mxu1 }
 0x13b   : > { %v1042_v27 = vrot.slane %v719_v53, 1  ;;  %v1046_v55 = vrot.slane %v842_v31, 1  ;;  %v721_v11 = vpop.f32.mrb[29].mxu0  ;;  %v844_v36 = vpop.f32.mrb[29].mxu1 }
 0x13c   : > { %v1044_v54 = vrot.slane %v721_v11, 1  ;;  %v1048_v29 = vrot.slane %v844_v36, 1  ;;  %v723_v32 = vpop.f32.mrb[30].mxu0  ;;  %v846_v30 = vpop.f32.mrb[30].mxu1 }
 0x13d   : > { %v1050_v50 = vrot.slane %v723_v32, 1  ;;  %v1054_v12 = vrot.slane %v846_v30, 1  ;;  %v725_v62 = vpop.f32.mrb[31].mxu0  ;;  %v848_v8 = vpop.f32.mrb[31].mxu1  ;;  %v4373_v63 = vsel %vm933_vm0, %v1034_v28, %v1042_v27  ;;  %v4376_v49 = vsel %vm933_vm0, %v1038_v7, %v1046_v55 }
 0x13e   : > { %5443 = vst [vmem:[#allocation16_spill] sm:$0xff] %v4373_v63  ;;  %5444 = vst [vmem:[#allocation17_spill] sm:$0xff] %v4376_v49  ;;  %v1052_v52 = vrot.slane %v725_v62, 1  ;;  %v1056_v37 = vrot.slane %v848_v8, 1  ;;  %v4379_v53 = vsel %vm933_vm0, %v1036_v41, %v1044_v54  ;;  %v4382_v31 = vsel %vm933_vm0, %v1040_v40, %v1048_v29 }
 0x13f   : > { %5445 = vst [vmem:[#allocation18_spill] sm:$0xff] %v4379_v53  ;;  %5446 = vst [vmem:[#allocation19_spill] sm:$0xff] %v4382_v31  ;;  %v4385_v36 = vsel %vm933_vm0, %v1042_v27, %v1050_v50  ;;  %v4388_v32 = vsel %vm933_vm0, %v1046_v55, %v1054_v12 }
 0x140   : > { %5447 = vst [vmem:[#allocation20_spill] sm:$0xff] %v4385_v36  ;;  %5448 = vst [vmem:[#allocation21_spill] sm:$0xff] %v4388_v32  ;;  %v4391_v28 = vsel %vm933_vm0, %v1044_v54, %v1052_v52  ;;  %v4394_v7 = vsel %vm933_vm0, %v1048_v29, %v1056_v37 }
 0x141   : > { %5449 = vst [vmem:[#allocation22_spill] sm:$0xff] %v4391_v28  ;;  %5450 = vst [vmem:[#allocation23_spill] sm:$0xff] %v4394_v7 }
 0x142   : > { %v729_v11 = vpop.f32.mrb[32].mxu0  ;;  %v852_v8 = vpop.f32.mrb[32].mxu1 }
 0x143   : > { %v1058_v30 = vrot.slane %v729_v11, 1  ;;  %v1062_v41 = vrot.slane %v852_v8, 1  ;;  %v731_v62 = vpop.f32.mrb[33].mxu0  ;;  %v854_v53 = vpop.f32.mrb[33].mxu1 }
 0x144   : > { %v1060_v40 = vrot.slane %v731_v62, 1  ;;  %v1064_v31 = vrot.slane %v854_v53, 1  ;;  %v733_v49 = vpop.f32.mrb[34].mxu0  ;;  %v856_v27 = vpop.f32.mrb[34].mxu1 }
 0x145   : > { %v1066_v36 = vrot.slane %v733_v49, 1  ;;  %v1070_v63 = vrot.slane %v856_v27, 1  ;;  %v735_v55 = vpop.f32.mrb[35].mxu0  ;;  %v858_v32 = vpop.f32.mrb[35].mxu1  ;;  %v4397_v54 = vsel %vm933_vm0, %v1050_v50, %v1058_v30  ;;  %v4400_v29 = vsel %vm933_vm0, %v1054_v12, %v1062_v41 }
 0x146   : > { %v1068_v7 = vrot.slane %v735_v55, 1  ;;  %v1072_v28 = vrot.slane %v858_v32, 1  ;;  %v4403_v11 = vsel %vm933_vm0, %v1052_v52, %v1060_v40  ;;  %v4406_v8 = vsel %vm933_vm0, %v1056_v37, %v1064_v31 }
 0x147   : > { %v4409_v53 = vsel %vm933_vm0, %v1058_v30, %v1066_v36  ;;  %v4412_v49 = vsel %vm933_vm0, %v1062_v41, %v1070_v63  ;;  %v5451_v50 = vrot.slane %v4196_v35, 1  ;;  %v5452_v12 = vrot.slane %v4198_v44, 1 }
 0x148   : > { %v4425_v52 = vsel %vm933_vm0, %v1060_v40, %v1068_v7  ;;  %v4428_v37 = vsel %vm933_vm0, %v1064_v31, %v1072_v28  ;;  %v5453_v30 = vrot.slane %v4200_v45, 1  ;;  %v5454_v35 = vrot.slane %v4202_v46, 1 }
 0x149   : > { %v4417_v62 = vsel %vm933_vm0, %v1066_v36, %v5451_v50  ;;  %v4422_v32 = vsel %vm933_vm0, %v1070_v63, %v5452_v12 }
 0x14a   : > { %v4433_v41 = vsel %vm933_vm0, %v1068_v7, %v5453_v30  ;;  %v4438_v36 = vsel %vm933_vm0, %v1072_v28, %v5454_v35  ;;  %v1348_v44 = vpop.f32.mrb[36].mxu0  ;;  %v1471_v27 = vpop.f32.mrb[36].mxu1 }
 0x14b   : > { %v4441_v63 = vadd.f32 %v1348_v44, %v4211_v58  ;;  %v4444_v40 = vadd.f32 %v1471_v27, %v4216_v59  ;;  %v1350_v31 = vpop.f32.mrb[37].mxu0  ;;  %v1473_v55 = vpop.f32.mrb[37].mxu1 }
 0x14c   : > { %v4447_v45 = vadd.f32 %v1350_v31, %v4221_v60  ;;  %v4450_v7 = vadd.f32 %v1473_v55, %v4226_v61  ;;  %v1352_v46 = vpop.f32.mrb[38].mxu0  ;;  %v1475_v50 = vpop.f32.mrb[38].mxu1 }
 0x14d   : > { %v4453_v28 = vadd.f32 %v1352_v46, %v4229_v13  ;;  %v4456_v12 = vadd.f32 %v1475_v50, %v4232_v14  ;;  %v1354_v58 = vpop.f32.mrb[39].mxu0  ;;  %v1477_v30 = vpop.f32.mrb[39].mxu1 }
 0x14e   : > { %v4459_v59 = vadd.f32 %v1354_v58, %v4235_v17  ;;  %v4462_v35 = vadd.f32 %v1477_v30, %v4238_v18 }
 0x152   : > { %v1358_v60 = vpop.f32.mrb[40].mxu0  ;;  %v1481_v44 = vpop.f32.mrb[40].mxu1 }
 0x153   : > { %v4465_v61 = vadd.f32 %v1358_v60, %v4241_v19  ;;  %v4468_v27 = vadd.f32 %v1481_v44, %v4244_v20  ;;  %v1360_v13 = vpop.f32.mrb[41].mxu0  ;;  %v1483_v31 = vpop.f32.mrb[41].mxu1 }
 0x154   : > { %v4471_v14 = vadd.f32 %v1360_v13, %v4247_v21  ;;  %v4474_v55 = vadd.f32 %v1483_v31, %v4250_v22  ;;  %v1362_v17 = vpop.f32.mrb[42].mxu0  ;;  %v1485_v46 = vpop.f32.mrb[42].mxu1 }
 0x155   : > { %v4477_v18 = vadd.f32 %v1362_v17, %v4253_v38  ;;  %v4480_v50 = vadd.f32 %v1485_v46, %v4256_v39  ;;  %v1364_v19 = vpop.f32.mrb[43].mxu0  ;;  %v1487_v58 = vpop.f32.mrb[43].mxu1 }
 0x156   : > { %v4483_v20 = vadd.f32 %v1364_v19, %v4259_v42  ;;  %v4486_v30 = vadd.f32 %v1487_v58, %v4262_v43 }
 0x15a   : > { %v1368_v21 = vpop.f32.mrb[44].mxu0  ;;  %v1491_v60 = vpop.f32.mrb[44].mxu1 }
 0x15b   : > { %v4489_v22 = vadd.f32 %v1368_v21, %v4265_v47  ;;  %v4492_v44 = vadd.f32 %v1491_v60, %v4268_v48  ;;  %v1370_v38 = vpop.f32.mrb[45].mxu0  ;;  %v1493_v13 = vpop.f32.mrb[45].mxu1 }
 0x15c   : > { %v4495_v39 = vadd.f32 %v1370_v38, %v4271_v2  ;;  %v4498_v31 = vadd.f32 %v1493_v13, %v4274_v51  ;;  %v1372_v42 = vpop.f32.mrb[46].mxu0  ;;  %v1495_v17 = vpop.f32.mrb[46].mxu1 }
 0x15d   : > { %v4501_v43 = vadd.f32 %v1372_v42, %v4277_v9  ;;  %v4504_v46 = vadd.f32 %v1495_v17, %v4280_v10  ;;  %v1374_v47 = vpop.f32.mrb[47].mxu0  ;;  %v1497_v19 = vpop.f32.mrb[47].mxu1 }
 0x15e   : > { %v4507_v48 = vadd.f32 %v1374_v47, %v4283_v15  ;;  %v4510_v58 = vadd.f32 %v1497_v19, %v4286_v16 }
 0x162   : > { %v1378_v2 = vpop.f32.mrb[48].mxu0  ;;  %v1501_v21 = vpop.f32.mrb[48].mxu1 }
 0x163   : > { %v4513_v51 = vadd.f32 %v1378_v2, %v4289_v23  ;;  %v4516_v60 = vadd.f32 %v1501_v21, %v4292_v24  ;;  %v1380_v9 = vpop.f32.mrb[49].mxu0  ;;  %v1503_v38 = vpop.f32.mrb[49].mxu1 }
 0x164   : > { %v4519_v10 = vadd.f32 %v1380_v9, %v4295_v25  ;;  %v4522_v13 = vadd.f32 %v1503_v38, %v4298_v26  ;;  %v1382_v15 = vpop.f32.mrb[50].mxu0  ;;  %v1505_v42 = vpop.f32.mrb[50].mxu1 }
 0x165   : > { %v4525_v16 = vadd.f32 %v1382_v15, %v4301_v56  ;;  %v4528_v17 = vadd.f32 %v1505_v42, %v4304_v57  ;;  %v1384_v23 = vpop.f32.mrb[51].mxu0  ;;  %v1507_v47 = vpop.f32.mrb[51].mxu1 }
 0x166   : > { %v4531_v24 = vadd.f32 %v1384_v23, %v4307_v0  ;;  %v4534_v19 = vadd.f32 %v1507_v47, %v4310_v1 }
 0x16a   : > { %v1388_v25 = vpop.f32.mrb[52].mxu0  ;;  %v1511_v2 = vpop.f32.mrb[52].mxu1 }
 0x16b   : > { %v4537_v26 = vadd.f32 %v1388_v25, %v4313_v3  ;;  %v4540_v21 = vadd.f32 %v1511_v2, %v4316_v4  ;;  %v1390_v56 = vpop.f32.mrb[53].mxu0  ;;  %v1513_v9 = vpop.f32.mrb[53].mxu1  ;;  %v5459_v4 = vld [vmem:[#allocation2_spill] sm:$0xff]  ;;  %v5461_v25 = vld [vmem:[#allocation3_spill] sm:$0xff] }
 0x16c   : > { %v4543_v57 = vadd.f32 %v1390_v56, %v4319_v5  ;;  %v4546_v38 = vadd.f32 %v1513_v9, %v4322_v6  ;;  %v1392_v0 = vpop.f32.mrb[54].mxu0  ;;  %v1515_v15 = vpop.f32.mrb[54].mxu1  ;;  %v5463_v6 = vld [vmem:[#allocation4_spill] sm:$0xff] }
 0x16d   : > { %v4549_v1 = vadd.f32 %v1392_v0, %v4325_v33  ;;  %v4552_v42 = vadd.f32 %v1515_v15, %v4328_v34  ;;  %v1394_v3 = vpop.f32.mrb[55].mxu0  ;;  %v1517_v23 = vpop.f32.mrb[55].mxu1  ;;  %v5467_v34 = vld [vmem:[#allocation6_spill] sm:$0xff] }
 0x16e   : > { %5455 = vst [vmem:[#allocation24_spill] sm:$0xff] %v4543_v57  ;;  %5456 = vst [vmem:[#allocation25_spill] sm:$0xff] %v4546_v38  ;;  %v4555_v47 = vadd.f32 %v1394_v3, %v5459_v4  ;;  %v4558_v2 = vadd.f32 %v1517_v23, %v5461_v25  ;;  %v5465_v38 = vld [vmem:[#allocation5_spill] sm:$0xff]  ;;  %v5471_v23 = vld [vmem:[#allocation8_spill] sm:$0xff] }
 0x16f   : > { %5457 = vst [vmem:[#allocation26_spill] sm:$0xff] %v4549_v1  ;;  %5458 = vst [vmem:[#allocation27_spill] sm:$0xff] %v4552_v42  ;;  %v5469_v42 = vld [vmem:[#allocation7_spill] sm:$0xff] }
 0x170   : > { %5460 = vst [vmem:[#allocation2_spill] sm:$0xff] %v4555_v47  ;;  %5462 = vst [vmem:[#allocation3_spill] sm:$0xff] %v4558_v2  ;;  %v5473_v2 = vld [vmem:[#allocation9_spill] sm:$0xff] }
 0x172   : > { %v1398_v5 = vpop.f32.mrb[56].mxu0  ;;  %v1521_v56 = vpop.f32.mrb[56].mxu1 }
 0x173   : > { %v4561_v9 = vadd.f32 %v1398_v5, %v5463_v6  ;;  %v4564_v57 = vadd.f32 %v1521_v56, %v5465_v38  ;;  %v1400_v33 = vpop.f32.mrb[57].mxu0  ;;  %v1523_v0 = vpop.f32.mrb[57].mxu1  ;;  %v5475_v38 = vld [vmem:[#allocation10_spill] sm:$0xff] }
 0x174   : > { %v4567_v15 = vadd.f32 %v1400_v33, %v5467_v34  ;;  %v4570_v1 = vadd.f32 %v1523_v0, %v5469_v42  ;;  %v1402_v3 = vpop.f32.mrb[58].mxu0  ;;  %v1525_v4 = vpop.f32.mrb[58].mxu1  ;;  %v5479_v42 = vld [vmem:[#allocation12_spill] sm:$0xff] }
 0x175   : > { %5464 = vst [vmem:[#allocation4_spill] sm:$0xff] %v4561_v9  ;;  %5466 = vst [vmem:[#allocation5_spill] sm:$0xff] %v4564_v57  ;;  %v4573_v25 = vadd.f32 %v1402_v3, %v5471_v23  ;;  %v4576_v47 = vadd.f32 %v1525_v4, %v5473_v2  ;;  %v1404_v5 = vpop.f32.mrb[59].mxu0  ;;  %v1527_v6 = vpop.f32.mrb[59].mxu1  ;;  %v5477_v57 = vld [vmem:[#allocation11_spill] sm:$0xff]  ;;  %v5483_v2 = vld [vmem:[#allocation14_spill] sm:$0xff] }
 0x176   : > { %5468 = vst [vmem:[#allocation6_spill] sm:$0xff] %v4567_v15  ;;  %5470 = vst [vmem:[#allocation7_spill] sm:$0xff] %v4570_v1  ;;  %v4579_v56 = vadd.f32 %v1404_v5, %v5475_v38  ;;  %v4582_v9 = vadd.f32 %v1527_v6, %v5477_v57  ;;  %v5481_v1 = vld [vmem:[#allocation13_spill] sm:$0xff]  ;;  %v5485_v57 = vld [vmem:[#allocation16_spill] sm:$0xff] }
 0x177   : > { %5472 = vst [vmem:[#allocation8_spill] sm:$0xff] %v4573_v25  ;;  %5474 = vst [vmem:[#allocation9_spill] sm:$0xff] %v4576_v47  ;;  %v5484_v47 = vld [vmem:[#allocation15_spill] sm:$0xff] }
 0x178   : > { %5476 = vst [vmem:[#allocation10_spill] sm:$0xff] %v4579_v56  ;;  %5478 = vst [vmem:[#allocation11_spill] sm:$0xff] %v4582_v9  ;;  %v5487_v9 = vld [vmem:[#allocation17_spill] sm:$0xff] }
 0x17a   : > { %v1408_v33 = vpop.f32.mrb[60].mxu0  ;;  %v1531_v34 = vpop.f32.mrb[60].mxu1 }
 0x17b   : > { %v4585_v0 = vadd.f32 %v1408_v33, %v5479_v42  ;;  %v4588_v15 = vadd.f32 %v1531_v34, %v5481_v1  ;;  %v1410_v3 = vpop.f32.mrb[61].mxu0  ;;  %v1533_v23 = vpop.f32.mrb[61].mxu1  ;;  %v5489_v1 = vld [vmem:[#allocation18_spill] sm:$0xff] }
 0x17c   : > { %v4591_v4 = vadd.f32 %v1410_v3, %v5483_v2  ;;  %v4594_v25 = vadd.f32 %v1533_v23, %v5484_v47  ;;  %v1412_v5 = vpop.f32.mrb[62].mxu0  ;;  %v1535_v38 = vpop.f32.mrb[62].mxu1  ;;  %v2566_v47 = vld [vmem:[%s5413_s3] sm:$0xff] }
 0x17d   : > { %5480 = vst [vmem:[#allocation12_spill] sm:$0xff] %v4585_v0  ;;  %5482 = vst [vmem:[#allocation13_spill] sm:$0xff] %v4588_v15  ;;  %v4597_v6 = vadd.f32 %v1412_v5, %v5485_v57  ;;  %v4600_v56 = vadd.f32 %v1535_v38, %v5487_v9  ;;  %v1414_v33 = vpop.f32.mrb[63].mxu0  ;;  %v1537_v42 = vpop.f32.mrb[63].mxu1  ;;  %v5491_v15 = vld [vmem:[#allocation19_spill] sm:$0xff]  ;;  %v3375_v3 = vcombine.high %v2566_v47, %v2566_v47  ;;  %v5493_v5 = vld [vmem:[#allocation20_spill] sm:$0xff] }
 0x17e   : > { %v4603_v34 = vadd.f32 %v1414_v33, %v5489_v1  ;;  %v4606_v0 = vadd.f32 %v1537_v42, %v5491_v15  ;;  %v5495_v9 = vld [vmem:[#allocation21_spill] sm:$0xff]  ;;  %v5497_v15 = vld [vmem:[#allocation22_spill] sm:$0xff]  ;;  %v5499_v1 = vld [vmem:[#allocation23_spill] sm:$0xff] }
 0x17f   : > { %5486 = vst [vmem:[#allocation14_spill] sm:$0xff] %v4597_v6  ;;  %5488 = vst [vmem:[#allocation15_spill] sm:$0xff] %v4600_v56  ;;  %3376 = vmatprep.mubr.msk.bf16.mxu0 %vm2573_vm1, %v3375_v3  ;;  %3377 = vmatprep.mubr.msk.bf16.mxu1 %vm2573_vm1, %v3375_v3 }
 0x180   : > { %5490 = vst [vmem:[#allocation16_spill] sm:$0xff] %v4603_v34  ;;  %5492 = vst [vmem:[#allocation17_spill] sm:$0xff] %v4606_v0 }
 0x182   : > { %v1418_v23 = vpop.f32.mrb[64].mxu0  ;;  %v1541_v2 = vpop.f32.mrb[64].mxu1 }
 0x183   : > { %v4612_v57 = vadd.f32 %v1418_v23, %v5493_v5  ;;  %v4615_v38 = vadd.f32 %v1541_v2, %v5495_v9  ;;  %v1420_v56 = vpop.f32.mrb[65].mxu0  ;;  %v1543_v33 = vpop.f32.mrb[65].mxu1 }
 0x184   : > { %v4618_v42 = vadd.f32 %v1420_v56, %v5497_v15  ;;  %v4621_v0 = vadd.f32 %v1543_v33, %v5499_v1  ;;  %v1422_v34 = vpop.f32.mrb[66].mxu0  ;;  %v1545_v47 = vpop.f32.mrb[66].mxu1  ;;  %v2366_v56 = vlaneseq }
 0x185   : > { %5494 = vst [vmem:[#allocation18_spill] sm:$0xff] %v4612_v57  ;;  %5496 = vst [vmem:[#allocation19_spill] sm:$0xff] %v4615_v38  ;;  %v4624_v6 = vadd.f32 %v1422_v34, %v4397_v54  ;;  %v4627_v23 = vadd.f32 %v1545_v47, %v4400_v29  ;;  %v1424_v2 = vpop.f32.mrb[67].mxu0  ;;  %v1547_v5 = vpop.f32.mrb[67].mxu1 }
 0x186   : > { %5498 = vst [vmem:[#allocation20_spill] sm:$0xff] %v4618_v42  ;;  %5500 = vst [vmem:[#allocation21_spill] sm:$0xff] %v4621_v0  ;;  %v4630_v9 = vadd.f32 %v1424_v2, %v4403_v11  ;;  %v4633_v3 = vadd.f32 %v1547_v5, %v4406_v8  ;;  %v2367_v5 = vshrl.u32 %v2366_v56, 7  ;;  %v2364_v56 = vld [vmem:[%s5412_s2] sm:$0xf] }
 0x187   : > { %5501 = vst [vmem:[#allocation22_spill] sm:$0xff] %v4624_v6  ;;  %5502 = vst [vmem:[#allocation23_spill] sm:$0xff] %v4627_v23 }
 0x188   : > { %5503 = vst [vmem:[#allocation28_spill] sm:$0xff] %v4630_v9  ;;  %5504 = vst [vmem:[#allocation29_spill] sm:$0xff] %v4633_v3 }
 0x18a   : > { %v1428_v15 = vpop.f32.mrb[68].mxu0  ;;  %v1551_v33 = vpop.f32.mrb[68].mxu1 }
 0x18b   : > { %v4636_v1 = vadd.f32 %v1428_v15, %v4409_v53  ;;  %v4639_v54 = vadd.f32 %v1551_v33, %v4412_v49  ;;  %v1430_v34 = vpop.f32.mrb[69].mxu0  ;;  %v1553_v29 = vpop.f32.mrb[69].mxu1 }
 0x18c   : > { %v4642_v47 = vadd.f32 %v1430_v34, %v4425_v52  ;;  %v4645_v11 = vadd.f32 %v1553_v29, %v4428_v37  ;;  %v1432_v2 = vpop.f32.mrb[70].mxu0  ;;  %v1555_v8 = vpop.f32.mrb[70].mxu1  ;;  %v2368_v34 = vsub.s32 0, %v2367_v5  ;;  %v2376_v37 = vsub.s32 2, %v2367_v5 }
 0x18d   : > { %5505 = vst [vmem:[#allocation30_spill] sm:$0xff] %v4636_v1  ;;  %5506 = vst [vmem:[#allocation31_spill] sm:$0xff] %v4639_v54  ;;  %v4648_v3 = vadd.f32 %v1432_v2, %v4417_v62  ;;  %v4651_v53 = vadd.f32 %v1555_v8, %v4422_v32  ;;  %v1434_v15 = vpop.f32.mrb[71].mxu0  ;;  %v1557_v49 = vpop.f32.mrb[71].mxu1  ;;  %v2372_v8 = vsub.s32 1, %v2367_v5 }
 0x18e   : > { %5507 = vst [vmem:[#allocation32_spill] sm:$0xff] %v4642_v47  ;;  %5508 = vst [vmem:[#allocation33_spill] sm:$0xff] %v4645_v11  ;;  %v4654_v33 = vadd.f32 %v1434_v15, %v4433_v41  ;;  %v4657_v52 = vadd.f32 %v1557_v49, %v4438_v36  ;;  %v2380_v41 = vsub.s32 3, %v2367_v5  ;;  %v4670_v36 = vrot.slane %v2364_v56, %v2368_v34 }
 0x18f   : > { %5509 = vst [vmem:[#allocation34_spill] sm:$0xff] %v4648_v3  ;;  %5510 = vst [vmem:[#allocation35_spill] sm:$0xff] %v4651_v53  ;;  %v4684_v6 = vrot.slane %v2364_v56, %v2372_v8 }
 0x190   : > { %5511 = vst [vmem:[#allocation36_spill] sm:$0xff] %v4654_v33  ;;  %5512 = vst [vmem:[#allocation37_spill] sm:$0xff] %v4657_v52  ;;  %v4672_v52 = vrot.slane %v2364_v56, %v2376_v37 }
 0x192   : > { %v4662_v29 = vpop.f32.mrb[72].mxu0  ;;  %v4664_v62 = vpop.f32.mrb[72].mxu1 }
 0x193   : > { %5513 = vst [vmem:[#allocation38_spill] sm:$0xff] %v4662_v29  ;;  %5514 = vst [vmem:[#allocation39_spill] sm:$0xff] %v4664_v62  ;;  %v4666_v32 = vpop.f32.mrb[73].mxu0  ;;  %v4668_v2 = vpop.f32.mrb[73].mxu1  ;;  %v5423_v11 = vrot.slane %v4662_v29, 2  ;;  %v5425_v33 = vrot.slane %v4664_v62, 2 }
 0x194   : > { %5515 = vst [vmem:[#allocation40_spill] sm:$0xff] %v4666_v32  ;;  %5516 = vst [vmem:[#allocation41_spill] sm:$0xff] %v4668_v2  ;;  %v1791_v15 = vpop.f32.mrb[74].mxu0  ;;  %v1914_v49 = vpop.f32.mrb[74].mxu1  ;;  %v5517_v9 = vrot.slane %v4666_v32, 2 }
 0x195   : > { %v2073_v47 = vrot.slane %v1791_v15, 2  ;;  %v2079_v53 = vrot.slane %v1914_v49, 2  ;;  %v1793_v54 = vpop.f32.mrb[75].mxu0  ;;  %v1916_v3 = vpop.f32.mrb[75].mxu1  ;;  %v4686_v15 = vrot.slane %v2364_v56, %v2380_v41 }
 0x196   : > { %v2076_v5 = vrot.slane %v1793_v54, 2  ;;  %v2082_v23 = vrot.slane %v1916_v3, 2  ;;  %v5518_v54 = vrot.slane %v4668_v2, 2 }
 0x197   : > { %v2074_v34 = vsel %vm2071_vm2, %v5423_v11, %v2073_v47  ;;  %v2080_v37 = vsel %vm2071_vm2, %v5425_v33, %v2079_v53 }
 0x198   : > { %v2292_v49 = vadd.f32 %v2074_v34, %v4441_v63  ;;  %v2294_v1 = vadd.f32 %v2080_v37, %v4444_v40  ;;  %v2077_v3 = vsel %vm2071_vm2, %v5517_v9, %v2076_v5  ;;  %v2083_v11 = vsel %vm2071_vm2, %v5518_v54, %v2082_v23 }
 0x199   : > { %v2293_v62 = vadd.f32 %v2077_v3, %v4447_v45  ;;  %v2295_v33 = vadd.f32 %v2083_v11, %v4450_v7 }
 0x19a   : > { %v4699_v8 = vadd.f32 %v4670_v36, %v2292_v49  ;;  %v4702_v56 = vadd.f32 %v4672_v52, %v2294_v1  ;;  %v1797_v63 = vpop.f32.mrb[76].mxu0  ;;  %v1920_v40 = vpop.f32.mrb[76].mxu1 }
 0x19b   : > { %v2084_v41 = vrot.slane %v1797_v63, 2  ;;  %v2088_v34 = vrot.slane %v1920_v40, 2  ;;  %v1799_v37 = vpop.f32.mrb[77].mxu0  ;;  %v1922_v9 = vpop.f32.mrb[77].mxu1  ;;  %v4705_v2 = vadd.f32 %v4684_v6, %v2293_v62  ;;  %v4708_v54 = vadd.f32 %v4686_v15, %v2295_v33 }
 0x19c   : > { %v2086_v11 = vrot.slane %v1799_v37, 2  ;;  %v2090_v49 = vrot.slane %v1922_v9, 2  ;;  %v1801_v1 = vpop.f32.mrb[78].mxu0  ;;  %v1924_v3 = vpop.f32.mrb[78].mxu1 }
 0x19d   : > { %v2085_v32 = vsel %vm2071_vm2, %v2073_v47, %v2084_v41  ;;  %v2089_v63 = vsel %vm2071_vm2, %v2079_v53, %v2088_v34  ;;  %v2092_v40 = vrot.slane %v1801_v1, 2  ;;  %v2096_v29 = vrot.slane %v1924_v3, 2  ;;  %v1803_v0 = vpop.f32.mrb[79].mxu0  ;;  %v1926_v62 = vpop.f32.mrb[79].mxu1 }
 0x19e   : > { %v2296_v42 = vadd.f32 %v2085_v32, %v4453_v28  ;;  %v2298_v33 = vadd.f32 %v2089_v63, %v4456_v12  ;;  %v2087_v45 = vsel %vm2071_vm2, %v2076_v5, %v2086_v11  ;;  %v2091_v7 = vsel %vm2071_vm2, %v2082_v23, %v2090_v49 }
 0x19f   : > { %v2297_v37 = vadd.f32 %v2087_v45, %v4459_v59  ;;  %v2299_v9 = vadd.f32 %v2091_v7, %v4462_v35  ;;  %v2093_v47 = vsel %vm2071_vm2, %v2084_v41, %v2092_v40  ;;  %v2097_v53 = vsel %vm2071_vm2, %v2088_v34, %v2096_v29 }
 0x1a0   : > { %v4723_v1 = vadd.f32 %v4670_v36, %v2296_v42  ;;  %v4726_v3 = vadd.f32 %v4672_v52, %v2298_v33  ;;  %v2300_v28 = vadd.f32 %v2093_v47, %v4465_v61  ;;  %v2302_v12 = vadd.f32 %v2097_v53, %v4468_v27 }
 0x1a1   : > { %v2094_v32 = vrot.slane %v1803_v0, 2  ;;  %v2098_v23 = vrot.slane %v1926_v62, 2  ;;  %v2391_v59 = vadd.f32 %v4684_v6, %v2297_v37  ;;  %v2459_v35 = vmax.f32 %v4705_v2, 0.0 }
 0x1a2   : > { %v2462_v5 = vmax.f32 %v4723_v1, 0.0  ;;  %v2464_v41 = vmax.f32 %v4726_v3, 0.0  ;;  %v4735_v42 = vadd.f32 %v4670_v36, %v2300_v28  ;;  %v4738_v34 = vadd.f32 %v4672_v52, %v2302_v12  ;;  %v1807_v45 = vpop.f32.mrb[80].mxu0  ;;  %v1930_v61 = vpop.f32.mrb[80].mxu1 }
 0x1a3   : > { %v2095_v27 = vsel %vm2071_vm2, %v2086_v11, %v2094_v32  ;;  %v2099_v0 = vsel %vm2071_vm2, %v2090_v49, %v2098_v23  ;;  %v2100_v7 = vrot.slane %v1807_v45, 2  ;;  %v2104_v63 = vrot.slane %v1930_v61, 2  ;;  %v1809_v62 = vpop.f32.mrb[81].mxu0  ;;  %v1932_v2 = vpop.f32.mrb[81].mxu1 }
 0x1a4   : > { %v4745_v47 = vadd.f32 %v2095_v27, %v4471_v14  ;;  %v4748_v53 = vadd.f32 %v2099_v0, %v4474_v55  ;;  %v1811_v1 = vpop.f32.mrb[82].mxu0  ;;  %v1934_v3 = vpop.f32.mrb[82].mxu1  ;;  %v2102_v28 = vrot.slane %v1809_v62, 2  ;;  %v2106_v12 = vrot.slane %v1932_v2, 2 }
 0x1a5   : > { %v2101_v11 = vsel %vm2071_vm2, %v2092_v40, %v2100_v7  ;;  %v2105_v49 = vsel %vm2071_vm2, %v2096_v29, %v2104_v63  ;;  %v1813_v45 = vpop.f32.mrb[83].mxu0  ;;  %v1936_v61 = vpop.f32.mrb[83].mxu1  ;;  %v2108_v38 = vrot.slane %v1811_v1, 2  ;;  %v2112_v14 = vrot.slane %v1934_v3, 2 }
 0x1a6   : > { %v2304_v33 = vadd.f32 %v2101_v11, %v4477_v18  ;;  %v2306_v37 = vadd.f32 %v2105_v49, %v4480_v50  ;;  %v2103_v27 = vsel %vm2071_vm2, %v2094_v32, %v2102_v28  ;;  %v2107_v55 = vsel %vm2071_vm2, %v2098_v23, %v2106_v12 }
 0x1a7   : > { %v2110_v0 = vrot.slane %v1813_v45, 2  ;;  %v2114_v57 = vrot.slane %v1936_v61, 2  ;;  %v4763_v62 = vadd.f32 %v2103_v27, %v4483_v20  ;;  %v4766_v18 = vadd.f32 %v2107_v55, %v4486_v30 }
 0x1a8   : > { %v4757_v40 = vadd.f32 %v4670_v36, %v2304_v33  ;;  %v4760_v29 = vadd.f32 %v4672_v52, %v2306_v37  ;;  %v2109_v50 = vsel %vm2071_vm2, %v2100_v7, %v2108_v38  ;;  %v2113_v32 = vsel %vm2071_vm2, %v2104_v63, %v2112_v14 }
 0x1a9   : > { %v2111_v23 = vsel %vm2071_vm2, %v2102_v28, %v2110_v0  ;;  %v2115_v2 = vsel %vm2071_vm2, %v2106_v12, %v2114_v57  ;;  %v2308_v37 = vadd.f32 %v2109_v50, %v4489_v22  ;;  %v2310_v20 = vadd.f32 %v2113_v32, %v4492_v44 }
 0x1aa   : > { %v2470_v33 = vmax.f32 %v4757_v40, 0.0  ;;  %v2472_v1 = vmax.f32 %v4760_v29, 0.0  ;;  %v1817_v3 = vpop.f32.mrb[84].mxu0  ;;  %v1940_v11 = vpop.f32.mrb[84].mxu1  ;;  %v4777_v30 = vadd.f32 %v2111_v23, %v4495_v39  ;;  %v4780_v7 = vadd.f32 %v2115_v2, %v4498_v31 }
 0x1ab   : > { %v2463_v63 = vmax.f32 %v2391_v59, 0.0  ;;  %v2393_v49 = vadd.f32 %v4686_v15, %v2299_v9  ;;  %v1819_v28 = vpop.f32.mrb[85].mxu0  ;;  %v1942_v12 = vpop.f32.mrb[85].mxu1  ;;  %v4784_v45 = vadd.f32 %v4670_v36, %v2308_v37  ;;  %v4787_v22 = vadd.f32 %v4672_v52, %v2310_v20 }
 0x1ac   : > { %v2461_v44 = vmax.f32 %v4708_v54, 0.0  ;;  %v5519_v61 = vmax.f32 %v4699_v8, 0.0  ;;  %v4792_v27 = vpop.f32.mrb[86].mxu0  ;;  %v4794_v31 = vpop.f32.mrb[86].mxu1  ;;  %v5520_v9 = vmax.f32 %v4702_v56, 0.0  ;;  %v2116_v32 = vrot.slane %v1817_v3, 2 }
 0x1ad   : > { %v2531_v59 = vpack.c.bf16 %v2463_v63, %v2459_v35  ;;  %v2465_v55 = vmax.f32 %v2393_v49, 0.0  ;;  %v4798_v23 = vpop.f32.mrb[87].mxu0  ;;  %v4800_v2 = vpop.f32.mrb[87].mxu1  ;;  %v2474_v37 = vmax.f32 %v4784_v45, 0.0  ;;  %v2476_v54 = vmax.f32 %v4787_v22, 0.0 }
 0x1ae   : > { %v2530_v39 = vpack.c.bf16 %v2462_v5, %v5519_v61  ;;  %v2532_v50 = vpack.c.bf16 %v2464_v41, %v5520_v9  ;;  %v2120_v8 = vrot.slane %v1940_v11, 2  ;;  %v2118_v5 = vrot.slane %v1819_v28, 2 }
 0x1af   : > { %2577 = vmatprep.subr.bf16.mxu0 %v2531_v59  ;;  %v2533_v20 = vpack.c.bf16 %v2465_v55, %v2461_v44  ;;  %v2117_v61 = vsel %vm2071_vm2, %v2108_v38, %v2116_v32  ;;  %v2122_v35 = vrot.slane %v1942_v12, 2  ;;  %v2124_v63 = vrot.slane %v4792_v27, 2 }
 0x1b0   : > { %2578 = vmatpush1.bf16.msra.mxu0 %v2530_v39  ;;  %v2312_v56 = vadd.f32 %v2117_v61, %v4501_v43  ;;  %v2121_v41 = vsel %vm2071_vm2, %v2112_v14, %v2120_v8  ;;  %v2119_v3 = vsel %vm2071_vm2, %v2110_v0, %v2118_v5  ;;  %v2128_v49 = vrot.slane %v4794_v31, 2 }
 0x1b1   : > { %2618 = vmatprep.subr.bf16.mxu1 %v2533_v20  ;;  %v2314_v11 = vadd.f32 %v2121_v41, %v4504_v46  ;;  %v4812_v28 = vadd.f32 %v2119_v3, %v4507_v48  ;;  %v2123_v38 = vsel %vm2071_vm2, %v2114_v57, %v2122_v35  ;;  %v2125_v12 = vsel %vm2071_vm2, %v2116_v32, %v2124_v63 }
 0x1b2   : > { %2619 = vmatpush1.bf16.msra.mxu1 %v2532_v50  ;;  %v4817_v44 = vadd.f32 %v4670_v36, %v2312_v56  ;;  %v4820_v43 = vadd.f32 %v2123_v38, %v4510_v58  ;;  %v2316_v14 = vadd.f32 %v2125_v12, %v4513_v51  ;;  %v2129_v0 = vsel %vm2071_vm2, %v2120_v8, %v2128_v49  ;;  %v1827_v39 = vpop.f32.mrb[88].mxu0  ;;  %v4824_v46 = vpop.f32.mrb[88].mxu1 }
 0x1b3   : > { %v4827_v48 = vadd.f32 %v4672_v52, %v2314_v11  ;;  %v2318_v57 = vadd.f32 %v2129_v0, %v4516_v60  ;;  %v2126_v27 = vrot.slane %v4798_v23, 2  ;;  %v2130_v31 = vrot.slane %v4800_v2, 2  ;;  %v4832_v59 = vpop.f32.mrb[89].mxu0  ;;  %v4834_v58 = vpop.f32.mrb[89].mxu1 }
 0x1b4   : > { %v2478_v51 = vmax.f32 %v4817_v44, 0.0  ;;  %v4838_v55 = vadd.f32 %v4670_v36, %v2316_v14  ;;  %v2395_v9 = vadd.f32 %v4684_v6, %v4745_v47  ;;  %v2399_v50 = vadd.f32 %v4684_v6, %v4763_v62  ;;  %v4844_v60 = vpop.f32.mrb[90].mxu0  ;;  %v4846_v32 = vpop.f32.mrb[90].mxu1 }
 0x1b5   : > { %v2480_v23 = vmax.f32 %v4827_v48, 0.0  ;;  %v4850_v2 = vadd.f32 %v4672_v52, %v2318_v57  ;;  %v2127_v8 = vsel %vm2071_vm2, %v2118_v5, %v2126_v27  ;;  %v2131_v20 = vsel %vm2071_vm2, %v2122_v35, %v2130_v31  ;;  %v4854_v61 = vpop.f32.mrb[91].mxu0  ;;  %v4856_v56 = vpop.f32.mrb[91].mxu1 }
 0x1b6   : > { %v2482_v47 = vmax.f32 %v4838_v55, 0.0  ;;  %v4860_v62 = vadd.f32 %v2127_v8, %v4519_v10  ;;  %v4863_v41 = vadd.f32 %v2131_v20, %v4522_v13  ;;  %v2467_v3 = vmax.f32 %v2395_v9, 0.0 }
 0x1b7   : > { %v2484_v11 = vmax.f32 %v4850_v2, 0.0  ;;  %v2471_v38 = vmax.f32 %v2399_v50, 0.0  ;;  %v2397_v5 = vadd.f32 %v4686_v15, %v4748_v53  ;;  %v2401_v35 = vadd.f32 %v4686_v15, %v4766_v18 }
 0x1b8   : > { %v5521_v12 = vmax.f32 %v4735_v42, 0.0  ;;  %v5522_v10 = vmax.f32 %v4738_v34, 0.0  ;;  %v2132_v0 = vrot.slane %v1827_v39, 2  ;;  %v2136_v57 = vrot.slane %v4824_v46, 2 }
 0x1b9   : > { %v2535_v9 = vpack.c.bf16 %v2471_v38, %v2467_v3  ;;  %v2469_v50 = vmax.f32 %v2397_v5, 0.0  ;;  %v2473_v8 = vmax.f32 %v2401_v35, 0.0  ;;  %v2134_v53 = vrot.slane %v4832_v59, 2 }
 0x1ba   : > { %v2534_v14 = vpack.c.bf16 %v2470_v33, %v5521_v12  ;;  %v2536_v13 = vpack.c.bf16 %v2472_v1, %v5522_v10  ;;  %v2133_v18 = vsel %vm2071_vm2, %v2124_v63, %v2132_v0  ;;  %v2137_v42 = vsel %vm2071_vm2, %v2128_v49, %v2136_v57  ;;  %v4884_v34 = vpop.f32.mrb[92].mxu0  ;;  %v4886_v29 = vpop.f32.mrb[92].mxu1 }
 0x1bb   : > { %v2138_v40 = vrot.slane %v4834_v58, 2  ;;  %v2140_v33 = vrot.slane %v4844_v60, 2  ;;  %2579 = vmatprep.subr.bf16.mxu0 %v2535_v9  ;;  %v2537_v1 = vpack.c.bf16 %v2473_v8, %v2469_v50  ;;  %v2320_v39 = vadd.f32 %v2133_v18, %v4525_v16  ;;  %v4891_v20 = vpop.f32.mrb[93].mxu0  ;;  %v4893_v63 = vpop.f32.mrb[93].mxu1  ;;  %v5523_v8 = vld [vmem:[#allocation24_spill] sm:$0xff] }
 0x1bc   : > { %v2322_v46 = vadd.f32 %v2137_v42, %v4528_v17  ;;  %v2135_v59 = vsel %vm2071_vm2, %v2126_v27, %v2134_v53  ;;  %2580 = vmatpush1.bf16.msra.mxu0 %v2534_v14  ;;  %v2144_v3 = vrot.slane %v4846_v32, 2  ;;  %v4901_v38 = vpop.f32.mrb[94].mxu0  ;;  %v4903_v16 = vpop.f32.mrb[94].mxu1  ;;  %v2142_v12 = vrot.slane %v4854_v61, 2  ;;  %v5524_v42 = vld [vmem:[#allocation25_spill] sm:$0xff] }
 0x1bd   : > { %v4896_v49 = vadd.f32 %v2135_v59, %v4531_v24  ;;  %v2139_v58 = vsel %vm2071_vm2, %v2130_v31, %v2138_v40  ;;  %v2141_v60 = vsel %vm2071_vm2, %v2132_v0, %v2140_v33  ;;  %2620 = vmatprep.subr.bf16.mxu1 %v2537_v1  ;;  %v4906_v17 = vadd.f32 %v4670_v36, %v2320_v39  ;;  %v4915_v5 = vpop.f32.mrb[95].mxu0  ;;  %v4917_v35 = vpop.f32.mrb[95].mxu1 }
 0x1be   : > { %v4909_v27 = vadd.f32 %v4672_v52, %v2322_v46  ;;  %v4912_v24 = vadd.f32 %v2139_v58, %v4534_v19  ;;  %v2324_v31 = vadd.f32 %v2141_v60, %v4537_v26  ;;  %2621 = vmatpush1.bf16.msra.mxu1 %v2536_v13  ;;  %v2145_v32 = vsel %vm2071_vm2, %v2136_v57, %v2144_v3 }
 0x1bf   : > { %v2146_v14 = vrot.slane %v4856_v56, 2  ;;  %v2403_v10 = vadd.f32 %v4684_v6, %v4777_v30  ;;  %v2486_v0 = vmax.f32 %v4906_v17, 0.0  ;;  %v2326_v9 = vadd.f32 %v2145_v32, %v4540_v21 }
 0x1c0   : > { %v2488_v19 = vmax.f32 %v4909_v27, 0.0  ;;  %v4927_v26 = vadd.f32 %v4670_v36, %v2324_v31  ;;  %v2143_v13 = vsel %vm2071_vm2, %v2134_v53, %v2142_v12  ;;  %v2407_v61 = vadd.f32 %v4684_v6, %v4812_v28 }
 0x1c1   : > { %v2147_v57 = vsel %vm2071_vm2, %v2138_v40, %v2146_v14  ;;  %v2475_v56 = vmax.f32 %v2403_v10, 0.0  ;;  %v4936_v30 = vadd.f32 %v4672_v52, %v2326_v9  ;;  %v4939_v18 = vadd.f32 %v2143_v13, %v5523_v8  ;;  %v5525_v13 = vld [vmem:[#allocation26_spill] sm:$0xff] }
 0x1c2   : > { %v2490_v50 = vmax.f32 %v4927_v26, 0.0  ;;  %v4942_v1 = vadd.f32 %v2147_v57, %v5524_v42  ;;  %v2479_v21 = vmax.f32 %v2407_v61, 0.0  ;;  %v2405_v53 = vadd.f32 %v4686_v15, %v4780_v7  ;;  %v4952_v39 = vpop.f32.mrb[96].mxu0  ;;  %v4954_v46 = vpop.f32.mrb[96].mxu1  ;;  %v5526_v57 = vld [vmem:[#allocation27_spill] sm:$0xff] }
 0x1c3   : > { %v2409_v40 = vadd.f32 %v4686_v15, %v4820_v43  ;;  %v2538_v28 = vpack.c.bf16 %v2478_v51, %v2474_v37  ;;  %v2492_v59 = vmax.f32 %v4936_v30, 0.0  ;;  %v2540_v58 = vpack.c.bf16 %v2480_v23, %v2476_v54  ;;  %v4963_v60 = vpop.f32.mrb[97].mxu0  ;;  %v4965_v45 = vpop.f32.mrb[97].mxu1 }
 0x1c4   : > { %v2148_v7 = vrot.slane %v4884_v34, 2  ;;  %v2152_v43 = vrot.slane %v4886_v29, 2  ;;  %v2539_v37 = vpack.c.bf16 %v2479_v21, %v2475_v56  ;;  %v2477_v44 = vmax.f32 %v2405_v53, 0.0  ;;  %v4968_v32 = vpop.f32.mrb[98].mxu0  ;;  %v4970_v10 = vpop.f32.mrb[98].mxu1  ;;  %v5528_v53 = vld [vmem:[#allocation3_spill] sm:$0xff] }
 0x1c5   : > { %v2481_v51 = vmax.f32 %v2409_v40, 0.0  ;;  %v2150_v31 = vrot.slane %v4891_v20, 2  ;;  %v2154_v48 = vrot.slane %v4893_v63, 2  ;;  %v2156_v23 = vrot.slane %v4901_v38, 2  ;;  %v4976_v34 = vpop.f32.mrb[99].mxu0  ;;  %v4978_v29 = vpop.f32.mrb[99].mxu1 }
 0x1c6   : > { %v2149_v22 = vsel %vm2071_vm2, %v2140_v33, %v2148_v7  ;;  %v2153_v54 = vsel %vm2071_vm2, %v2144_v3, %v2152_v43  ;;  %2581 = vmatprep.subr.bf16.mxu0 %v2539_v37  ;;  %v5527_v33 = vld [vmem:[#allocation2_spill] sm:$0xff]  ;;  %v2160_v38 = vrot.slane %v4903_v16, 2  ;;  %v2411_v16 = vadd.f32 %v4684_v6, %v4860_v62 }
 0x1c7   : > { %v2541_v9 = vpack.c.bf16 %v2481_v51, %v2477_v44  ;;  %v2328_v20 = vadd.f32 %v2149_v22, %v5525_v13  ;;  %v2330_v61 = vadd.f32 %v2153_v54, %v5526_v57  ;;  %v2151_v56 = vsel %vm2071_vm2, %v2142_v12, %v2150_v31  ;;  %2582 = vmatpush1.bf16.msra.mxu0 %v2538_v28  ;;  %v5529_v12 = vld [vmem:[#allocation4_spill] sm:$0xff]  ;;  %v5530_v54 = vld [vmem:[#allocation5_spill] sm:$0xff] }
 0x1c8   : > { %v4984_v8 = vadd.f32 %v2151_v56, %v5527_v33  ;;  %v2155_v63 = vsel %vm2071_vm2, %v2146_v14, %v2154_v48  ;;  %v2157_v3 = vsel %vm2071_vm2, %v2148_v7, %v2156_v23  ;;  %v2161_v37 = vsel %vm2071_vm2, %v2152_v43, %v2160_v38  ;;  %v5531_v33 = vld [vmem:[#allocation6_spill] sm:$0xff] }
 0x1c9   : > { %2622 = vmatprep.subr.bf16.mxu1 %v2541_v9  ;;  %v4990_v42 = vadd.f32 %v4670_v36, %v2328_v20  ;;  %v4993_v21 = vadd.f32 %v4672_v52, %v2330_v61  ;;  %v4996_v40 = vadd.f32 %v2155_v63, %v5528_v53  ;;  %v2332_v28 = vadd.f32 %v2157_v3, %v5529_v12  ;;  %v5532_v3 = vld [vmem:[#allocation7_spill] sm:$0xff] }
 0x1ca   : > { %2623 = vmatpush1.bf16.msra.mxu1 %v2540_v58  ;;  %v2158_v14 = vrot.slane %v4915_v5, 2  ;;  %v2162_v7 = vrot.slane %v4917_v35, 2  ;;  %v2334_v9 = vadd.f32 %v2161_v37, %v5530_v54  ;;  %v5010_v13 = vpop.f32.mrb[100].mxu0  ;;  %v5012_v58 = vpop.f32.mrb[100].mxu1  ;;  %v2415_v62 = vadd.f32 %v4684_v6, %v4896_v49 }
 0x1cb   : > { %v2494_v44 = vmax.f32 %v4990_v42, 0.0  ;;  %v2496_v51 = vmax.f32 %v4993_v21, 0.0  ;;  %v5007_v22 = vadd.f32 %v4670_v36, %v2332_v28  ;;  %v2483_v43 = vmax.f32 %v2411_v16, 0.0  ;;  %v5018_v20 = vpop.f32.mrb[101].mxu0  ;;  %v5020_v57 = vpop.f32.mrb[101].mxu1 }
 0x1cc   : > { %v2159_v5 = vsel %vm2071_vm2, %v2150_v31, %v2158_v14  ;;  %v2163_v35 = vsel %vm2071_vm2, %v2154_v48, %v2162_v7  ;;  %v5024_v56 = vadd.f32 %v4672_v52, %v2334_v9  ;;  %v5032_v48 = vpop.f32.mrb[102].mxu0  ;;  %v5034_v53 = vpop.f32.mrb[102].mxu1  ;;  %v2487_v49 = vmax.f32 %v2415_v62, 0.0 }
 0x1cd   : > { %v2498_v61 = vmax.f32 %v5007_v22, 0.0  ;;  %v5027_v63 = vadd.f32 %v2159_v5, %v5531_v33  ;;  %v5030_v31 = vadd.f32 %v2163_v35, %v5532_v3  ;;  %v2413_v12 = vadd.f32 %v4686_v15, %v4863_v41  ;;  %v5044_v16 = vpop.f32.mrb[103].mxu0  ;;  %v5046_v54 = vpop.f32.mrb[103].mxu1 }
 0x1ce   : > { %v2417_v28 = vadd.f32 %v4686_v15, %v4912_v24  ;;  %v2542_v37 = vpack.c.bf16 %v2486_v0, %v2482_v47  ;;  %v2500_v9 = vmax.f32 %v5024_v56, 0.0  ;;  %v2544_v5 = vpack.c.bf16 %v2488_v19, %v2484_v11  ;;  %v5533_v11 = vld [vmem:[#allocation8_spill] sm:$0xff] }
 0x1cf   : > { %v2164_v41 = vrot.slane %v4952_v39, 2  ;;  %v2168_v24 = vrot.slane %v4954_v46, 2  ;;  %v2543_v35 = vpack.c.bf16 %v2487_v49, %v2483_v43  ;;  %v2485_v55 = vmax.f32 %v2413_v12, 0.0  ;;  %v5534_v39 = vld [vmem:[#allocation9_spill] sm:$0xff]  ;;  %v5535_v43 = vld [vmem:[#allocation10_spill] sm:$0xff] }
 0x1d0   : > { %v2489_v62 = vmax.f32 %v2417_v28, 0.0  ;;  %v2166_v47 = vrot.slane %v4963_v60, 2  ;;  %v2170_v33 = vrot.slane %v4965_v45, 2  ;;  %v2172_v2 = vrot.slane %v4968_v32, 2  ;;  %v5536_v28 = vld [vmem:[#allocation11_spill] sm:$0xff] }
 0x1d1   : > { %v2165_v17 = vsel %vm2071_vm2, %v2156_v23, %v2164_v41  ;;  %v2169_v0 = vsel %vm2071_vm2, %v2160_v38, %v2168_v24  ;;  %2583 = vmatprep.subr.bf16.mxu0 %v2543_v35  ;;  %v2176_v45 = vrot.slane %v4970_v10, 2  ;;  %v5537_v35 = vld [vmem:[#allocation12_spill] sm:$0xff]  ;;  %v2186_v42 = vrot.slane %v5020_v57, 2 }
 0x1d2   : > { %v2545_v27 = vpack.c.bf16 %v2489_v62, %v2485_v55  ;;  %v2336_v19 = vadd.f32 %v2165_v17, %v5533_v11  ;;  %v2338_v3 = vadd.f32 %v2169_v0, %v5534_v39  ;;  %v2167_v46 = vsel %vm2071_vm2, %v2158_v14, %v2166_v47  ;;  %2584 = vmatpush1.bf16.msra.mxu0 %v2542_v37  ;;  %v5069_v38 = vpop.f32.mrb[104].mxu0  ;;  %v5071_v32 = vpop.f32.mrb[104].mxu1 }
 0x1d3   : > { %v5064_v49 = vadd.f32 %v2167_v46, %v5535_v43  ;;  %v2171_v60 = vsel %vm2071_vm2, %v2162_v7, %v2170_v33  ;;  %v2173_v23 = vsel %vm2071_vm2, %v2164_v41, %v2172_v2  ;;  %v5083_v55 = vpop.f32.mrb[105].mxu0  ;;  %v5085_v41 = vpop.f32.mrb[105].mxu1  ;;  %v2177_v10 = vsel %vm2071_vm2, %v2168_v24, %v2176_v45 }
 0x1d4   : > { %2624 = vmatprep.subr.bf16.mxu1 %v2545_v27  ;;  %v5074_v12 = vadd.f32 %v4670_v36, %v2336_v19  ;;  %v5077_v14 = vadd.f32 %v4672_v52, %v2338_v3  ;;  %v5080_v37 = vadd.f32 %v2171_v60, %v5536_v28  ;;  %v2340_v7 = vadd.f32 %v2173_v23, %v5537_v35  ;;  %v5092_v27 = vpop.f32.mrb[106].mxu0  ;;  %v5094_v11 = vpop.f32.mrb[106].mxu1 }
 0x1d5   : > { %2625 = vmatpush1.bf16.msra.mxu1 %v2544_v5  ;;  %v2174_v62 = vrot.slane %v4976_v34, 2  ;;  %v2178_v17 = vrot.slane %v4978_v29, 2  ;;  %v2419_v0 = vadd.f32 %v4684_v6, %v4939_v18  ;;  %v5538_v5 = vld [vmem:[#allocation13_spill] sm:$0xff]  ;;  %v5102_v46 = vpop.f32.mrb[107].mxu0  ;;  %v5104_v34 = vpop.f32.mrb[107].mxu1  ;;  %v2423_v43 = vadd.f32 %v4684_v6, %v4984_v8 }
 0x1d6   : > { %v2502_v19 = vmax.f32 %v5074_v12, 0.0  ;;  %v2504_v39 = vmax.f32 %v5077_v14, 0.0  ;;  %v5099_v3 = vadd.f32 %v4670_v36, %v2340_v7  ;;  %v2342_v24 = vadd.f32 %v2177_v10, %v5538_v5 }
 0x1d7   : > { %v2175_v29 = vsel %vm2071_vm2, %v2166_v47, %v2174_v62  ;;  %v2179_v18 = vsel %vm2071_vm2, %v2170_v33, %v2178_v17  ;;  %v2491_v60 = vmax.f32 %v2419_v0, 0.0  ;;  %v2495_v10 = vmax.f32 %v2423_v43, 0.0 }
 0x1d8   : > { %v2506_v23 = vmax.f32 %v5099_v3, 0.0  ;;  %v5112_v28 = vadd.f32 %v4672_v52, %v2342_v24  ;;  %v5115_v35 = vadd.f32 %v2175_v29, %v4591_v4  ;;  %v5118_v7 = vadd.f32 %v2179_v18, %v4594_v25  ;;  %v5541_v18 = vld [vmem:[#allocation16_spill] sm:$0xff] }
 0x1d9   : > { %v2421_v47 = vadd.f32 %v4686_v15, %v4942_v1  ;;  %v2425_v33 = vadd.f32 %v4686_v15, %v4996_v40  ;;  %v2546_v8 = vpack.c.bf16 %v2494_v44, %v2490_v50  ;;  %v2548_v25 = vpack.c.bf16 %v2496_v51, %v2492_v59  ;;  %v5539_v59 = vld [vmem:[#allocation14_spill] sm:$0xff]  ;;  %v5540_v51 = vld [vmem:[#allocation15_spill] sm:$0xff] }
 0x1da   : > { %v2508_v0 = vmax.f32 %v5112_v28, 0.0  ;;  %v2180_v4 = vrot.slane %v5010_v13, 2  ;;  %v2184_v5 = vrot.slane %v5012_v58, 2  ;;  %v2547_v1 = vpack.c.bf16 %v2495_v10, %v2491_v60  ;;  %v5542_v60 = vld [vmem:[#allocation17_spill] sm:$0xff] }
 0x1db   : > { %v2493_v24 = vmax.f32 %v2421_v47, 0.0  ;;  %v2497_v29 = vmax.f32 %v2425_v33, 0.0  ;;  %v2182_v40 = vrot.slane %v5018_v20, 2  ;;  %v2188_v30 = vrot.slane %v5032_v48, 2 }
 0x1dc   : > { %v2181_v26 = vsel %vm2071_vm2, %v2172_v2, %v2180_v4  ;;  %v2185_v50 = vsel %vm2071_vm2, %v2176_v45, %v2184_v5  ;;  %2585 = vmatprep.subr.bf16.mxu0 %v2547_v1  ;;  %v2187_v20 = vsel %vm2071_vm2, %v2178_v17, %v2186_v42  ;;  %v2192_v57 = vrot.slane %v5034_v53, 2 }
 0x1dd   : > { %v2549_v21 = vpack.c.bf16 %v2497_v29, %v2493_v24  ;;  %v2344_v44 = vadd.f32 %v2181_v26, %v5539_v59  ;;  %v2346_v13 = vadd.f32 %v2185_v50, %v5540_v51  ;;  %v2183_v58 = vsel %vm2071_vm2, %v2174_v62, %v2182_v40  ;;  %2586 = vmatpush1.bf16.msra.mxu0 %v2546_v8  ;;  %v5543_v62 = vld [vmem:[#allocation18_spill] sm:$0xff]  ;;  %v5544_v29 = vld [vmem:[#allocation19_spill] sm:$0xff] }
 0x1de   : > { %v5144_v43 = vadd.f32 %v2183_v58, %v5541_v18  ;;  %v2189_v2 = vsel %vm2071_vm2, %v2180_v4, %v2188_v30  ;;  %v5156_v10 = vadd.f32 %v2187_v20, %v5542_v60  ;;  %v2193_v33 = vsel %vm2071_vm2, %v2184_v5, %v2192_v57 }
 0x1df   : > { %2626 = vmatprep.subr.bf16.mxu1 %v2549_v21  ;;  %v5150_v48 = vadd.f32 %v4670_v36, %v2344_v44  ;;  %v5153_v45 = vadd.f32 %v4672_v52, %v2346_v13  ;;  %v2348_v47 = vadd.f32 %v2189_v2, %v5543_v62  ;;  %v2190_v17 = vrot.slane %v5044_v16, 2  ;;  %v5545_v21 = vld [vmem:[#allocation20_spill] sm:$0xff]  ;;  %v5546_v44 = vld [vmem:[#allocation21_spill] sm:$0xff] }
 0x1e0   : > { %2627 = vmatpush1.bf16.msra.mxu1 %v2548_v25  ;;  %v2194_v8 = vrot.slane %v5046_v54, 2  ;;  %v2427_v53 = vadd.f32 %v4684_v6, %v5027_v63  ;;  %v2350_v26 = vadd.f32 %v2193_v33, %v5544_v29  ;;  %v2431_v16 = vadd.f32 %v4684_v6, %v5064_v49 }
 0x1e1   : > { %v2510_v4 = vmax.f32 %v5150_v48, 0.0  ;;  %v2512_v1 = vmax.f32 %v5153_v45, 0.0  ;;  %v5167_v24 = vadd.f32 %v4670_v36, %v2348_v47  ;;  %v2191_v25 = vsel %vm2071_vm2, %v2182_v40, %v2190_v17  ;;  %v5549_v47 = vld [vmem:[#allocation28_spill] sm:$0xff] }
 0x1e2   : > { %v2195_v5 = vsel %vm2071_vm2, %v2186_v42, %v2194_v8  ;;  %v2499_v54 = vmax.f32 %v2427_v53, 0.0  ;;  %v5176_v63 = vadd.f32 %v4672_v52, %v2350_v26  ;;  %v5179_v59 = vadd.f32 %v2191_v25, %v5545_v21  ;;  %v5552_v26 = vld [vmem:[#allocation29_spill] sm:$0xff] }
 0x1e3   : > { %v2514_v50 = vmax.f32 %v5167_v24, 0.0  ;;  %v5182_v51 = vadd.f32 %v2195_v5, %v5546_v44  ;;  %v2503_v13 = vmax.f32 %v2431_v16, 0.0  ;;  %v2429_v40 = vadd.f32 %v4686_v15, %v5030_v31  ;;  %v5553_v5 = vld [vmem:[#allocation30_spill] sm:$0xff] }
 0x1e4   : > { %v2433_v42 = vadd.f32 %v4686_v15, %v5080_v37  ;;  %v2550_v49 = vpack.c.bf16 %v2502_v19, %v2498_v61  ;;  %v2516_v58 = vmax.f32 %v5176_v63, 0.0  ;;  %v2552_v18 = vpack.c.bf16 %v2504_v39, %v2500_v9  ;;  %v5547_v9 = vld [vmem:[#allocation22_spill] sm:$0xff] }
 0x1e5   : > { %v2196_v20 = vrot.slane %v5069_v38, 2  ;;  %v2200_v2 = vrot.slane %v5071_v32, 2  ;;  %v2551_v31 = vpack.c.bf16 %v2503_v13, %v2499_v54  ;;  %v2501_v60 = vmax.f32 %v2429_v40, 0.0  ;;  %v5548_v38 = vld [vmem:[#allocation23_spill] sm:$0xff]  ;;  %v5554_v16 = vld [vmem:[#allocation34_spill] sm:$0xff] }
 0x1e6   : > { %v2505_v62 = vmax.f32 %v2433_v42, 0.0  ;;  %v2198_v37 = vrot.slane %v5083_v55, 2  ;;  %v2202_v12 = vrot.slane %v5085_v41, 2  ;;  %v2204_v56 = vrot.slane %v5092_v27, 2 }
 0x1e7   : > { %v2197_v22 = vsel %vm2071_vm2, %v2188_v30, %v2196_v20  ;;  %v2201_v61 = vsel %vm2071_vm2, %v2192_v57, %v2200_v2  ;;  %2587 = vmatprep.subr.bf16.mxu0 %v2551_v31  ;;  %v5550_v57 = vld [vmem:[#allocation38_spill] sm:$0xff]  ;;  %v2206_v21 = vrot.slane %v5102_v46, 2  ;;  %v2210_v44 = vrot.slane %v5104_v34, 2 }
 0x1e8   : > { %v2553_v14 = vpack.c.bf16 %v2505_v62, %v2501_v60  ;;  %v2352_v19 = vadd.f32 %v2197_v22, %v5547_v9  ;;  %v2354_v39 = vadd.f32 %v2201_v61, %v5548_v38  ;;  %v2199_v32 = vsel %vm2071_vm2, %v2190_v17, %v2198_v37  ;;  %2588 = vmatpush1.bf16.msra.mxu0 %v2550_v49  ;;  %v5557_v22 = vld [vmem:[#allocation31_spill] sm:$0xff]  ;;  %v5561_v38 = vld [vmem:[#allocation32_spill] sm:$0xff] }
 0x1e9   : > { %v2353_v33 = vadd.f32 %v2199_v32, %v5549_v47  ;;  %v2203_v55 = vsel %vm2071_vm2, %v2194_v8, %v2202_v12  ;;  %v2205_v30 = vsel %vm2071_vm2, %v2196_v20, %v2204_v56  ;;  %v5551_v53 = vrot.slane %v5550_v57, 2  ;;  %v5558_v61 = vld [vmem:[#allocation35_spill] sm:$0xff] }
 0x1ea   : > { %2628 = vmatprep.subr.bf16.mxu1 %v2553_v14  ;;  %v2446_v27 = vadd.f32 %v4670_v36, %v2352_v19  ;;  %v2448_v29 = vadd.f32 %v4672_v52, %v2354_v39  ;;  %v2355_v25 = vadd.f32 %v2203_v55, %v5552_v26  ;;  %v2356_v17 = vadd.f32 %v2205_v30, %v5553_v5  ;;  %v5559_v14 = vld [vmem:[#allocation40_spill] sm:$0xff]  ;;  %v5563_v55 = vld [vmem:[#allocation41_spill] sm:$0xff] }
 0x1eb   : > { %v2288_v41 = vsel %vm2071_vm2, %v2204_v56, %v5551_v53  ;;  %2629 = vmatpush1.bf16.msra.mxu1 %v2552_v18  ;;  %v2208_v8 = vrot.slane %v5094_v11, 2  ;;  %v2435_v49 = vadd.f32 %v4684_v6, %v5115_v35  ;;  %v5555_v18 = vld [vmem:[#allocation39_spill] sm:$0xff]  ;;  %v2207_v11 = vsel %vm2071_vm2, %v2198_v37, %v2206_v21  ;;  %v5562_v39 = vld [vmem:[#allocation36_spill] sm:$0xff]  ;;  %v5565_v53 = vld [vmem:[#allocation33_spill] sm:$0xff] }
 0x1ec   : > { %v2360_v54 = vadd.f32 %v2288_v41, %v5554_v16  ;;  %v2518_v13 = vmax.f32 %v2446_v27, 0.0  ;;  %v2520_v40 = vmax.f32 %v2448_v29, 0.0  ;;  %v2450_v42 = vadd.f32 %v4670_v36, %v2356_v17  ;;  %v5566_v27 = vld [vmem:[#allocation37_spill] sm:$0xff] }
 0x1ed   : > { %v2209_v31 = vsel %vm2071_vm2, %v2200_v2, %v2208_v8  ;;  %v5556_v60 = vrot.slane %v5555_v18, 2  ;;  %v5560_v9 = vrot.slane %v5559_v14, 2  ;;  %v2211_v32 = vsel %vm2071_vm2, %v2202_v12, %v2210_v44  ;;  %v3667_v14 = vld [vmem:[%s5414_s4 + $0x88] sm:$0xff]  }
 0x1ee   : > { %v2454_v20 = vadd.f32 %v4670_v36, %v2360_v54  ;;  %v2522_v46 = vmax.f32 %v2450_v42, 0.0  ;;  %v2358_v34 = vadd.f32 %v2209_v31, %v5557_v22  ;;  %v2357_v36 = vadd.f32 %v2207_v11, %v5561_v38  ;;  %v3663_v22 = vld [vmem:[%s5414_s4 + $0x80] sm:$0xff]   ;;  %v3671_v38 = vld [vmem:[%s5414_s4 + $0x90] sm:$0xff]  }
 0x1ef   : > { %v2290_v62 = vsel %vm2071_vm2, %v2208_v8, %v5556_v60  ;;  %v2289_v19 = vsel %vm2071_vm2, %v2206_v21, %v5560_v9  ;;  %v5564_v30 = vrot.slane %v5563_v55, 2  ;;  %v2359_v41 = vadd.f32 %v2211_v32, %v5565_v53  ;;  %v3668_v9 = vld [vmem:[%s5414_s4 + $0x50] sm:$0xff]   ;;  %v3675_v32 = vld [vmem:[%s5414_s4 + $0x98] sm:$0xff]   ;;  %v3678_v55 = vld [vmem:[%s5414_s4 + $0x20] sm:$0xff]  }
 0x1f0   : > { %v2362_v56 = vadd.f32 %v2290_v62, %v5558_v61  ;;  %v2526_v35 = vmax.f32 %v2454_v20, 0.0  ;;  %v2361_v2 = vadd.f32 %v2289_v19, %v5562_v39  ;;  %v2452_v47 = vadd.f32 %v4672_v52, %v2358_v34  ;;  %v3700_v62 = vld [vmem:[%s5413_s3] sm:$0xff]  ;;  %v3664_v34 = vld [vmem:[%s5414_s4 + $0x48] sm:$0xff]   ;;  %v3669_v19 = vld [vmem:[%s5414_s4 + $0xd0] sm:$0xff]  }
 0x1f1   : > { %v2291_v57 = vsel %vm2071_vm2, %v2210_v44, %v5564_v30  ;;  %v2439_v26 = vadd.f32 %v4684_v6, %v5144_v43  ;;  %v2507_v5 = vmax.f32 %v2435_v49, 0.0  ;;  %v2437_v17 = vadd.f32 %v4686_v15, %v5118_v7  ;;  %v3665_v61 = vld [vmem:[%s5414_s4 + $0xc8] sm:$0xff]   ;;  %v3673_v39 = vld [vmem:[%s5414_s4 + $0xd8] sm:$0xff]   ;;  %v3679_v30 = vld [vmem:[%s5414_s4 + $0xa0] sm:$0xff]  }
 0x1f2   : > { %v2456_v37 = vadd.f32 %v4672_v52, %v2362_v56  ;;  %v2363_v29 = vadd.f32 %v2291_v57, %v5566_v27  ;;  %v2524_v12 = vmax.f32 %v2452_v47, 0.0  ;;  %v2441_v52 = vadd.f32 %v4686_v15, %v5156_v10  ;;  %v3666_v56 = vld [vmem:[%s5414_s4 + $0x8] sm:$0xff]   ;;  %v3676_v47 = vld [vmem:[%s5414_s4 + $0x60] sm:$0xff]  }
 0x1f3   : > { %v2554_v54 = vpack.c.bf16 %v2510_v4, %v2506_v23  ;;  %v2511_v8 = vmax.f32 %v2439_v26, 0.0  ;;  %v2509_v21 = vmax.f32 %v2437_v17, 0.0  ;;  %v2556_v43 = vpack.c.bf16 %v2512_v1, %v2508_v0  ;;  %v3680_v57 = vld [vmem:[%s5414_s4 + $0x68] sm:$0xff]   ;;  %v3685_v26 = vld [vmem:[%s5414_s4 + $0xf0] sm:$0xff]  }
 0x1f4   : > { %v2528_v16 = vmax.f32 %v2456_v37, 0.0  ;;  %v2443_v7 = vadd.f32 %v4684_v6, %v5179_v59  ;;  %v2513_v44 = vmax.f32 %v2441_v52, 0.0  ;;  %v2447_v42 = vadd.f32 %v4684_v6, %v2353_v33  ;;  %v3677_v37 = vld [vmem:[%s5414_s4 + $0xe0] sm:$0xff]   ;;  %v3681_v53 = vld [vmem:[%s5414_s4 + $0xe8] sm:$0xff]   ;;  %v3687_v17 = vld [vmem:[%s5414_s4 + $0xb0] sm:$0xff]  }
 0x1f5   : > { %v2445_v10 = vadd.f32 %v4686_v15, %v5182_v51  ;;  %v2449_v3 = vadd.f32 %v4686_v15, %v2355_v25  ;;  %v2555_v48 = vpack.c.bf16 %v2511_v8, %v2507_v5  ;;  %v2558_v4 = vpack.c.bf16 %v2518_v13, %v2514_v50  ;;  %v3683_v27 = vld [vmem:[%s5414_s4 + $0xa8] sm:$0xff]   ;;  %v3686_v5 = vld [vmem:[%s5414_s4 + $0x30] sm:$0xff]   ;;  %v3690_v52 = vld [vmem:[%s5414_s4 + $0x38] sm:$0xff]  }
 0x1f6   : > { %v2515_v23 = vmax.f32 %v2443_v7, 0.0  ;;  %v2560_v28 = vpack.c.bf16 %v2520_v40, %v2516_v58  ;;  %v2557_v0 = vpack.c.bf16 %v2513_v44, %v2509_v21  ;;  %v2519_v45 = vmax.f32 %v2447_v42, 0.0 }
 0x1f7   : > { %v2517_v1 = vmax.f32 %v2445_v10, 0.0  ;;  %v2521_v59 = vmax.f32 %v2449_v3, 0.0  ;;  %2589 = vmatprep.subr.bf16.mxu0 %v2555_v48  ;;  %v2451_v33 = vadd.f32 %v4684_v6, %v2357_v36  ;;  %v2455_v49 = vadd.f32 %v4684_v6, %v2361_v2  ;;  %v3660_v6 = vld [vmem:[%s5414_s4 + $0x40] sm:$0xff]   ;;  %v3672_v36 = vld [vmem:[%s5414_s4 + $0x58] sm:$0xff]  }
 0x1f8   : > { %v2453_v51 = vadd.f32 %v4686_v15, %v2359_v41  ;;  %v2457_v25 = vadd.f32 %v4686_v15, %v2363_v29  ;;  %2630 = vmatprep.subr.bf16.mxu1 %v2557_v0  ;;  %2590 = vmatpush1.bf16.msra.mxu0 %v2554_v54  ;;  %v2559_v24 = vpack.c.bf16 %v2519_v45, %v2515_v23  ;;  %v3661_v15 = vld [vmem:[%s5414_s4 + $0xc0] sm:$0xff]   ;;  %v3674_v2 = vld [vmem:[%s5414_s4 + $0x18] sm:$0xff]   ;;  %v3682_v41 = vld [vmem:[%s5414_s4 + $0x28] sm:$0xff]   ;;  %v3710_v8 = vmov 0.0  }
 0x1f9   : > { %v2561_v50 = vpack.c.bf16 %v2521_v59, %v2517_v1  ;;  %v2562_v13 = vpack.c.bf16 %v2526_v35, %v2522_v46  ;;  %2631 = vmatpush1.bf16.msra.mxu1 %v2556_v43  ;;  %v2523_v63 = vmax.f32 %v2451_v33, 0.0  ;;  %v2527_v58 = vmax.f32 %v2455_v49, 0.0  ;;  %v3662_v46 = vld [vmem:[%s5414_s4] sm:$0xff]   ;;  %v3670_v35 = vld [vmem:[%s5414_s4 + $0x10] sm:$0xff]   ;;  %v3691_v54 = vld [vmem:[%s5414_s4 + $0xb8] sm:$0xff]  }
 0x1fa   : > { %v2525_v40 = vmax.f32 %v2453_v51, 0.0  ;;  %v2529_v20 = vmax.f32 %v2457_v25, 0.0  ;;  %2591 = vmatprep.subr.bf16.mxu0 %v2559_v24  ;;  %v2564_v31 = vpack.c.bf16 %v2528_v16, %v2524_v12  ;;  %v3374_v11 = vcombine.low %v3700_v62, %v3700_v62  ;;  %v3684_v29 = vld [vmem:[%s5414_s4 + $0x70] sm:$0xff]   ;;  %v3688_v12 = vld [vmem:[%s5414_s4 + $0x78] sm:$0xff]   ;;  %v3692_v3 = vld [vmem:[%s5415_s5] sm:$0xff]  }
 0x1fb   : > { %2632 = vmatprep.subr.bf16.mxu1 %v2561_v50  ;;  %v2563_v18 = vpack.c.bf16 %v2527_v58, %v2523_v63  ;;  %v3689_v16 = vld [vmem:[%s5414_s4 + $0xf8] sm:$0xff]   ;;  %v3693_v1 = vld [vmem:[%s5415_s5 + $0x8] sm:$0xff]   ;;  %v3694_v59 = vld [vmem:[%s5415_s5 + $0x10] sm:$0xff]  }
 0x1fc   : > { %v2565_v60 = vpack.c.bf16 %v2529_v20, %v2525_v40  ;;  %2592 = vmatpush1.bf16.msra.mxu0 %v2558_v4  ;;  %v3695_v33 = vld [vmem:[%s5415_s5 + $0x18] sm:$0xff]   ;;  %v3696_v49 = vld [vmem:[%s5415_s5 + $0x20] sm:$0xff]   ;;  %v3697_v51 = vld [vmem:[%s5415_s5 + $0x28] sm:$0xff]  }
 0x1fd   : > { %2633 = vmatpush1.bf16.msra.mxu1 %v2560_v28  ;;  %2593 = vmatprep.subr.bf16.mxu0 %v2563_v18  ;;  %v3698_v25 = vld [vmem:[%s5415_s5 + $0x30] sm:$0xff]   ;;  %v3699_v24 = vld [vmem:[%s5415_s5 + $0x38] sm:$0xff]  }
 0x1fe   : > { %2634 = vmatprep.subr.bf16.mxu1 %v2565_v60 }
 0x200   : > { %2594 = vmatpush1.bf16.msra.mxu0 %v2562_v13 }
 0x201   : > { %2635 = vmatpush1.bf16.msra.mxu1 %v2564_v31  ;;  %3421 = vmatprep.subr.bf16.mxu0 %v3660_v6 }
 0x202   : > { %3443 = vmatprep.subr.bf16.mxu1 %v3661_v15 }
 0x203   : > { %2610 = vmatmul.mubr.bf16.vlgmr.msra.gmra.mrb[108].mxu0 %v3374_v11 }
 0x204   : > { %2651 = vmatmul.mubr.bf16.vlgmr.msra.gmra.mrb[108].mxu1 %v3374_v11  ;;  %3422 = vmatpush3.bf16.msra.mxu0 %v3662_v46  ;;  %v3410_v11 = vld [vmem:[%s5416_s6] ss:$0 sm:$0xff] }
 0x205   : > { %3444 = vmatpush3.bf16.msra.mxu1 %v3663_v22  ;;  %3423 = vmatprep.subr.bf16.mxu0 %v3664_v34 }
 0x206   : > { %3445 = vmatprep.subr.bf16.mxu1 %v3665_v61 }
 0x208   : > { %3424 = vmatpush3.bf16.msra.mxu0 %v3666_v56 }
 0x209   : > { %3446 = vmatpush3.bf16.msra.mxu1 %v3667_v14  ;;  %3425 = vmatprep.subr.bf16.mxu0 %v3668_v9 }
 0x20a   : > { %3447 = vmatprep.subr.bf16.mxu1 %v3669_v19 }
 0x20c   : > { %3426 = vmatpush3.bf16.msra.mxu0 %v3670_v35 }
 0x20d   : > { %3448 = vmatpush3.bf16.msra.mxu1 %v3671_v38  ;;  %3427 = vmatprep.subr.bf16.mxu0 %v3672_v36 }
 0x20e   : > { %3449 = vmatprep.subr.bf16.mxu1 %v3673_v39 }
 0x210   : > { %3428 = vmatpush3.bf16.msra.mxu0 %v3674_v2 }
 0x211   : > { %3450 = vmatpush3.bf16.msra.mxu1 %v3675_v32  ;;  %3429 = vmatprep.subr.bf16.mxu0 %v3676_v47 }
 0x212   : > { %3451 = vmatprep.subr.bf16.mxu1 %v3677_v37 }
 0x214   : > { %3430 = vmatpush3.bf16.msra.mxu0 %v3678_v55 }
 0x215   : > { %3452 = vmatpush3.bf16.msra.mxu1 %v3679_v30  ;;  %3431 = vmatprep.subr.bf16.mxu0 %v3680_v57 }
 0x216   : > { %3453 = vmatprep.subr.bf16.mxu1 %v3681_v53 }
 0x218   : > { %3432 = vmatpush3.bf16.msra.mxu0 %v3682_v41 }
 0x219   : > { %3454 = vmatpush3.bf16.msra.mxu1 %v3683_v27  ;;  %3433 = vmatprep.subr.bf16.mxu0 %v3684_v29 }
 0x21a   : > { %3455 = vmatprep.subr.bf16.mxu1 %v3685_v26 }
 0x21c   : > { %3434 = vmatpush3.bf16.msra.mxu0 %v3686_v5 }
 0x21d   : > { %3456 = vmatpush3.bf16.msra.mxu1 %v3687_v17  ;;  %3435 = vmatprep.subr.bf16.mxu0 %v3688_v12 }
 0x21e   : > { %3457 = vmatprep.subr.bf16.mxu1 %v3689_v16 }
 0x220   : > { %3436 = vmatpush3.bf16.msra.mxu0 %v3690_v52 }
 0x221   : > { %3458 = vmatpush3.bf16.msra.mxu1 %v3691_v54  ;;  %3474 = vmatprep.subr.bf16.mxu0 %v3710_v8 }
 0x2d6   : > { %v2611_v21 = vpop.f32.mrb[108].mxu0 }
 0x2d7   : > { %v2652_v43 = vpop.f32.mrb[108].mxu1  ;;  %v2613_v7 = vpop.f32.mrb[109].mxu0  ;;  %v2659_v48 = vpack.c.bf16 %v2611_v21, %v2611_v21 }
 0x2d8   : > { %v2660_v44 = vpack.c.bf16 %v2613_v7, %v2613_v7  ;;  %v2654_v42 = vpop.f32.mrb[109].mxu1  ;;  %v2615_v10 = vpop.f32.mrb[110].mxu0  ;;  %v2661_v0 = vpack.c.bf16 %v2652_v43, %v2652_v43 }
 0x2d9   : > { %v2662_v23 = vpack.c.bf16 %v2654_v42, %v2654_v42  ;;  %v2656_v4 = vpop.f32.mrb[110].mxu1  ;;  %v2616_v28 = vpop.f32.mrb[111].mxu0 }
 0x2da   : > { %2951 = vmatprep.mubr.bf16.mxu0 %v2660_v44  ;;  %v2657_v45 = vpop.f32.mrb[111].mxu1 }
 0x2db   : > { %2991 = vmatprep.mubr.bf16.mxu1 %v2662_v23  ;;  %2952 = vmatmul.mubr.bf16.vlgmr.msra.gmra.mrb[112].mxu0 %v2659_v48 }
 0x2dc   : > { %2992 = vmatmul.mubr.bf16.vlgmr.msra.gmra.mrb[112].mxu1 %v2661_v0  ;;  %3475 = vmatpush3.bf16.msra.mxu0 %v3692_v3 }
 0x2dd   : > { %3476 = vmatprep.subr.bf16.mxu0 %v3710_v8  ;;  %3490 = vmatprep.mubr.msk.bf16.mxu0 %vm3711_vm3, %v3710_v8 }
 0x2e0   : > { %3477 = vmatpush3.bf16.msra.mxu0 %v3693_v1 }
 0x2e1   : > { %3478 = vmatprep.subr.bf16.mxu0 %v3710_v8 }
 0x2e4   : > { %3479 = vmatpush3.bf16.msra.mxu0 %v3694_v59 }
 0x2e5   : > { %3480 = vmatprep.subr.bf16.mxu0 %v3710_v8 }
 0x2e8   : > { %3481 = vmatpush3.bf16.msra.mxu0 %v3695_v33 }
 0x2e9   : > { %3482 = vmatprep.subr.bf16.mxu0 %v3710_v8 }
 0x2ec   : > { %3483 = vmatpush3.bf16.msra.mxu0 %v3696_v49 }
 0x2ed   : > { %3484 = vmatprep.subr.bf16.mxu0 %v3710_v8 }
 0x2f0   : > { %3485 = vmatpush3.bf16.msra.mxu0 %v3697_v51 }
 0x2f1   : > { %3486 = vmatprep.subr.bf16.mxu0 %v3710_v8 }
 0x2f4   : > { %3487 = vmatpush3.bf16.msra.mxu0 %v3698_v25 }
 0x2f5   : > { %3488 = vmatprep.subr.bf16.mxu0 %v3710_v8 }
 0x2f8   : > { %3489 = vmatpush3.bf16.msra.mxu0 %v3699_v24 }
 0x3ae   : > { %v3437_v50 = vpop.f32.mrb[112].mxu0 }
 0x3af   : > { %v3459_v13 = vpop.f32.mrb[112].mxu1  ;;  %v3438_v63 = vpop.f32.mrb[113].mxu0 }
 0x3b0   : > { %v3439_v58 = vadd.f32 %v3438_v63, %v3437_v50  ;;  %v3460_v40 = vpop.f32.mrb[113].mxu1  ;;  %v3440_v20 = vpop.f32.mrb[114].mxu0 }
 0x3b1   : > { %v3461_v31 = vadd.f32 %v3460_v40, %v3459_v13  ;;  %v3462_v18 = vpop.f32.mrb[114].mxu1  ;;  %v3441_v60 = vpop.f32.mrb[115].mxu0 }
 0x3b2   : > { %v3463_v6 = vpop.f32.mrb[115].mxu1 }
 0x3b3   : > { %v2994_v15 = vadd.f32 %v3461_v31, %v3439_v58 }
 0x3b5   : > { %2999 = vst [vmem:[%s316_s17] sm:$0xff] %v2994_v15  ;;  %v3000_v62 = vpack.c.bf16 %v2994_v15, %v2994_v15 }
 0x3b7   : > { %3491 = vmatmul.mubr.bf16.vlgmr.msra.gmra.mrb[116].mxu0 %v3000_v62 }
 0x48a   : > { %v3106_v46 = vpop.f32.mrb[116].mxu0 }
 0x48b   : > { %v3107_v22 = vadd.f32 %v3410_v11, %v3106_v46  ;;  %v3492_v34 = vpop.f32.mrb[117].mxu0 }
 0x48c   : > { %v3109_v61 = vpop.f32.mrb[118].mxu0 }
 0x48d   : > { %3112 = vst [vmem:[%s312_s21] sm:$0xff] %v3107_v22  ;;  %v3493_v56 = vpop.f32.mrb[119].mxu0 }
 0x48e PF: > { %s19_s27 = sadd.s32 1, %s3707_s27  }
 0x48f   : > { %p16_p5 = scmp.ge.s32.totalorder %s19_s27, 4  }
 0x491   :  { %18 = sbr.rel (!%p16_p5) target bundleno = 1 (0x1), region = 92 }

</bundles_post_ra>
